<compile_context>
chip_gen: v7x
topology: tpu7x:2x2x1
jax: 0.10.0
libtpu: 0.0.40
codegen_flags: <defaults>
</compile_context>

<pallas_src>
from functools import partial

import jax
import jax.numpy as jnp
import numpy as np
from jax import lax
from jax.experimental import pallas as pl
from jax.experimental.pallas import tpu as pltpu

BN_EPS = 1e-5
LANE = 128
VMEM_LIMIT = 64 * 1024 * 1024


def _round_up(x, m):
    return (x + m - 1) // m * m


def _pick_tile_m(m):
    # prefer large lane-dense row tiles over the flattened N*H*W dim
    for tm in (1024, 512, 256, 128, 64, 8):
        if m >= tm:
            return tm
    return max(m, 1)


def _pick_strip(h):
    # output rows per grid step in the depthwise pass
    for s in (64, 32, 16, 8, 4, 2, 1):
        if h % s == 0:
            return s
    return h


def _cparams(semantics):
    return pltpu.CompilerParams(dimension_semantics=semantics,
                                vmem_limit_bytes=VMEM_LIMIT)


# ------------------ pass 1: depthwise 3x3 conv + BN1 stats -------------------
def _dwconv_stats_kernel(x_ref, w_ref, d_ref, sum_ref, sq_ref):
    # x_ref  : (1, 1, S+2, W+2, C)  zero-padded NHWC strip (with 1-row halo)
    # w_ref  : (9, C)               3x3 depthwise taps, row k = dy*3 + dx
    # d_ref  : (1, 1, S, W, C)      depthwise output (pre-BN1), bf16
    # sum_ref: (1, 1, 8, C)         per-channel partial sum (replicated sublanes)
    # sq_ref : (1, 1, 8, C)         per-channel partial sum of squares
    c = x_ref.shape[-1]
    s_rows = d_ref.shape[2]
    w_cols = d_ref.shape[3]
    r = 8 if s_rows % 8 == 0 else s_rows       # in-kernel sub-strip height
    nsub = s_rows // r

    # Hoist the sublane (W-axis) column shifts once: 2 misaligned slices total,
    # reused across all 3 dy taps and all sub-strips.
    xcols = [x_ref[0, 0, :, dx:dx + w_cols, :] for dx in range(3)]  # (S+2, W, C)

    tot = jnp.zeros((1, 1, c), jnp.float32)
    tot2 = jnp.zeros((1, 1, c), jnp.float32)
    for sub in range(nsub):                    # static unroll over 8-row strips
        r0 = sub * r
        acc = jnp.zeros((r, w_cols, c), jnp.float32)
        for dx in range(3):
            xc = xcols[dx]
            for dy in range(3):
                acc = acc + xc[r0 + dy:r0 + dy + r] * w_ref[dy * 3 + dx].reshape(1, 1, c)
        q = acc.astype(jnp.bfloat16)           # bf16 intermediate (HBM traffic /2)
        d_ref[0, 0, r0:r0 + r] = q
        qf = q.astype(jnp.float32)             # stats on the quantized values
        tot = tot + jnp.sum(qf, axis=(0, 1), keepdims=True)
        tot2 = tot2 + jnp.sum(qf * qf, axis=(0, 1), keepdims=True)

    sum_ref[...] = jnp.broadcast_to(tot.reshape(1, 1, 1, c), sum_ref.shape)
    sq_ref[...] = jnp.broadcast_to(tot2.reshape(1, 1, 1, c), sq_ref.shape)


def depthwise_conv_stats(x_nhwc, w_dw):
    # x_nhwc: (N, H, W, Cin), w_dw: (3, 3, Cin)
    n, h, w, cin = x_nhwc.shape
    cp = _round_up(cin, LANE)
    s = _pick_strip(h)
    ns = h // s

    # single fused pad: +1 halo ring and channel pad to a lane multiple
    xp = jnp.pad(x_nhwc.astype(jnp.float32),
                 ((0, 0), (1, 1), (1, 1), (0, cp - cin)))
    # build overlapping row strips (each with its 2-row halo) as wrapper glue
    if ns == 1:
        x_strips = xp[:, None]                               # (N, 1, H+2, W+2, Cp)
    else:
        x_strips = jnp.stack([xp[:, i * s:i * s + s + 2] for i in range(ns)],
                             axis=1)                         # (N, ns, S+2, W+2, Cp)
    wd = jnp.pad(w_dw.astype(jnp.float32).reshape(9, cin),
                 ((0, 0), (0, cp - cin)))

    d, psum, psq = pl.pallas_call(
        _dwconv_stats_kernel,
        out_shape=(
            jax.ShapeDtypeStruct((n, ns, s, w, cp), jnp.bfloat16),
            jax.ShapeDtypeStruct((n, ns, 8, cp), jnp.float32),
            jax.ShapeDtypeStruct((n, ns, 8, cp), jnp.float32),
        ),
        grid_spec=pltpu.PrefetchScalarGridSpec(
            num_scalar_prefetch=0,
            grid=(n, ns),
            in_specs=[
                pl.BlockSpec((1, 1, s + 2, w + 2, cp), lambda i, j: (i, j, 0, 0, 0)),
                pl.BlockSpec((9, cp), lambda i, j: (0, 0)),
            ],
            out_specs=[
                pl.BlockSpec((1, 1, s, w, cp), lambda i, j: (i, j, 0, 0, 0)),
                pl.BlockSpec((1, 1, 8, cp), lambda i, j: (i, j, 0, 0)),
                pl.BlockSpec((1, 1, 8, cp), lambda i, j: (i, j, 0, 0)),
            ],
        ),
        compiler_params=_cparams(("parallel", "parallel")),
    )(x_strips, wd)

    m = n * h * w
    mean = (jnp.sum(psum[:, :, 0, :], axis=(0, 1)) / m).reshape(1, cp)
    var = jnp.maximum(
        jnp.sum(psq[:, :, 0, :], axis=(0, 1)).reshape(1, cp) / m - mean * mean, 0.0)
    return d, mean, var


# --------- pass 2: BN1+ReLU -> pointwise 1x1 conv (MXU) -> BN2 stats ---------
def _pw_stats_kernel(d_ref, s1_ref, t1_ref, w_ref, sum_ref, sq_ref, *, m_real):
    # d_ref  : (TM, Cp)    depthwise output tile, bf16
    # s1/t1  : (1, Cp)     folded BN1 scale / shift (f32)
    # w_ref  : (Cp, Cq)    pointwise weights, bf16
    # sum/sq : (1, 8, Cq)  per-channel partial stats for BN2
    tm = d_ref.shape[0]
    cq = sum_ref.shape[-1]
    a = jnp.maximum(d_ref[...].astype(jnp.float32) * s1_ref[...] + t1_ref[...], 0.0)
    if m_real is not None:     # mask the padded tail rows out of the BN2 stats
        row = pl.program_id(0) * tm + lax.broadcasted_iota(jnp.int32, (tm, 1), 0)
        a = jnp.where(row < m_real, a, 0.0)
    y = jnp.dot(a.astype(jnp.bfloat16), w_ref[...],
                preferred_element_type=jnp.float32)            # bf16 MXU, f32 acc
    sum_ref[...] = jnp.broadcast_to(
        jnp.sum(y, axis=0, keepdims=True).reshape(1, 1, cq), (1, 8, cq))
    sq_ref[...] = jnp.broadcast_to(
        jnp.sum(y * y, axis=0, keepdims=True).reshape(1, 1, cq), (1, 8, cq))


def pointwise_stats(d_flat, scale1, shift1, w_pw_bf16, m_real, tm):
    m_pad, cp = d_flat.shape
    cq = w_pw_bf16.shape[-1]
    gm = m_pad // tm
    kern = partial(_pw_stats_kernel, m_real=None if m_pad == m_real else m_real)

    psum, psq = pl.pallas_call(
        kern,
        out_shape=(
            jax.ShapeDtypeStruct((gm, 8, cq), jnp.float32),
            jax.ShapeDtypeStruct((gm, 8, cq), jnp.float32),
        ),
        grid_spec=pltpu.PrefetchScalarGridSpec(
            num_scalar_prefetch=0,
            grid=(gm,),
            in_specs=[
                pl.BlockSpec((tm, cp), lambda i: (i, 0)),
                pl.BlockSpec((1, cp), lambda i: (0, 0)),
                pl.BlockSpec((1, cp), lambda i: (0, 0)),
                pl.BlockSpec((cp, cq), lambda i: (0, 0)),
            ],
            out_specs=[
                pl.BlockSpec((1, 8, cq), lambda i: (i, 0, 0)),
                pl.BlockSpec((1, 8, cq), lambda i: (i, 0, 0)),
            ],
        ),
        compiler_params=_cparams(("parallel",)),
    )(d_flat, scale1, shift1, w_pw_bf16)

    mean = (jnp.sum(psum[:, 0, :], axis=0) / m_real).reshape(1, cq)
    var = jnp.maximum(
        jnp.sum(psq[:, 0, :], axis=0).reshape(1, cq) / m_real - mean * mean, 0.0)
    return mean, var


# --- pass 3: BN1+ReLU -> 1x1 conv (recomputed, MXU) -> BN2+ReLU, final out ---
def _pw_apply_kernel(d_ref, s1_ref, t1_ref, w_ref, s2_ref, t2_ref, o_ref):
    a = jnp.maximum(d_ref[...].astype(jnp.float32) * s1_ref[...] + t1_ref[...], 0.0)
    y = jnp.dot(a.astype(jnp.bfloat16), w_ref[...],
                preferred_element_type=jnp.float32)
    o_ref[...] = jnp.maximum(y * s2_ref[...] + t2_ref[...], 0.0).astype(o_ref.dtype)


def pointwise_apply(d_flat, scale1, shift1, w_pw_bf16, scale2, shift2, tm):
    m_pad, cp = d_flat.shape
    cq = w_pw_bf16.shape[-1]
    gm = m_pad // tm
    return pl.pallas_call(
        _pw_apply_kernel,
        out_shape=jax.ShapeDtypeStruct((m_pad, cq), jnp.float32),
        grid_spec=pltpu.PrefetchScalarGridSpec(
            num_scalar_prefetch=0,
            grid=(gm,),
            in_specs=[
                pl.BlockSpec((tm, cp), lambda i: (i, 0)),
                pl.BlockSpec((1, cp), lambda i: (0, 0)),
                pl.BlockSpec((1, cp), lambda i: (0, 0)),
                pl.BlockSpec((cp, cq), lambda i: (0, 0)),
                pl.BlockSpec((1, cq), lambda i: (0, 0)),
                pl.BlockSpec((1, cq), lambda i: (0, 0)),
            ],
            out_specs=pl.BlockSpec((tm, cq), lambda i: (i, 0)),
        ),
        compiler_params=_cparams(("parallel",)),
    )(d_flat, scale1, shift1, w_pw_bf16, scale2, shift2)


# ------------------------------ module forward -------------------------------
def _fold_bn(gamma, beta, mean, var, c_pad):
    c = gamma.shape[0]
    g = jnp.pad(gamma.astype(jnp.float32), (0, c_pad - c)).reshape(1, c_pad)
    b = jnp.pad(beta.astype(jnp.float32), (0, c_pad - c)).reshape(1, c_pad)
    scale = g * lax.rsqrt(var + BN_EPS)
    shift = b - mean * scale
    return scale, shift


def outconv_dsc_forward(x_nchw, p):
    # NCHW -> NHWC (layout glue)
    x = jnp.transpose(x_nchw, (0, 2, 3, 1))
    n, h, w, cin = x.shape
    cout = p["w_pw"].shape[-1]
    cp = _round_up(cin, LANE)
    cq = _round_up(cout, LANE)

    # pass 1: depthwise 3x3 conv (+ BN1 batch stats).  Conv bias dropped: it
    # is cancelled exactly by the BN mean subtraction.
    d, mean1, var1 = depthwise_conv_stats(x, p["w_dw"])
    scale1, shift1 = _fold_bn(p["g1"], p["be1"], mean1, var1, cp)

    # flatten d and pad M to a multiple of the row tile (padded rows masked
    # out of the BN2 stats, dropped from the final output slice)
    m = n * h * w
    tm = _pick_tile_m(m)
    m_pad = -(-m // tm) * tm
    d_flat = d.reshape(m, cp)
    if m_pad != m:
        d_flat = jnp.pad(d_flat, ((0, m_pad - m), (0, 0)))

    w_pw = jnp.pad(p["w_pw"].astype(jnp.float32),
                   ((0, cp - cin), (0, cq - cout))).astype(jnp.bfloat16)

    # pass 2: BN1+ReLU fused into the pointwise 1x1 conv -> BN2 batch stats
    # only (the (M, Cq) pre-BN2 tensor is never written back to HBM)
    mean2, var2 = pointwise_stats(d_flat, scale1, shift1, w_pw, m, tm)
    scale2, shift2 = _fold_bn(p["g2"], p["be2"], mean2, var2, cq)

    # pass 3: recompute the cheap 1x1 conv fused with BN2 + ReLU, final output
    out_flat = pointwise_apply(d_flat, scale1, shift1, w_pw, scale2, shift2, tm)

    out = out_flat[:m, :cout].reshape(n, h, w, cout)
    return jnp.transpose(out, (0, 3, 1, 2))   # back to NCHW


# ----------------------------- params / reference ----------------------------
def init_outconv_dsc_params(key, in_ch, out_ch):
    ks = jax.random.split(key, 8)
    return dict(
        # depthwise Conv2d(in_ch, in_ch, 3, padding=1, groups=in_ch)
        w_dw=0.1 * jax.random.normal(ks[0], (3, 3, in_ch), jnp.float32),
        b_dw=0.1 * jax.random.normal(ks[1], (in_ch,), jnp.float32),
        g1=1.0 + 0.1 * jax.random.normal(ks[2], (in_ch,), jnp.float32),
        be1=0.1 * jax.random.normal(ks[3], (in_ch,), jnp.float32),
        # pointwise Conv2d(in_ch, out_ch, 1)
        w_pw=0.1 * jax.random.normal(ks[4], (in_ch, out_ch), jnp.float32),
        b_pw=0.1 * jax.random.normal(ks[5], (out_ch,), jnp.float32),
        g2=1.0 + 0.1 * jax.random.normal(ks[6], (out_ch,), jnp.float32),
        be2=0.1 * jax.random.normal(ks[7], (out_ch,), jnp.float32),
    )


def _ref_bn_relu(y, g, b):
    mean = y.mean(axis=(0, 1, 2), keepdims=True)
    var = ((y - mean) ** 2).mean(axis=(0, 1, 2), keepdims=True)   # biased var
    return jnp.maximum((y - mean) / jnp.sqrt(var + BN_EPS) * g + b, 0.0)


def outconv_dsc_reference(x_nchw, p):
    # pure-JAX f32 reference (PyTorch training-mode semantics, biases included)
    x = jnp.transpose(x_nchw, (0, 2, 3, 1)).astype(jnp.float32)
    cin = x.shape[-1]
    w_dw = p["w_dw"].reshape(3, 3, 1, cin)                 # HWIO, groups=cin
    d = lax.conv_general_dilated(
        x, w_dw, window_strides=(1, 1), padding="SAME",
        dimension_numbers=("NHWC", "HWIO", "NHWC"),
        feature_group_count=cin) + p["b_dw"]
    d = _ref_bn_relu(d, p["g1"], p["be1"])
    y = jnp.einsum("nhwc,cd->nhwd", d, p["w_pw"]) + p["b_pw"]
    y = _ref_bn_relu(y, p["g2"], p["be2"])
    return jnp.transpose(y, (0, 3, 1, 2))


# ----------------------------------- main -------------------------------------
if __name__ == "__main__":
    key = jax.random.PRNGKey(0)
    k_x, k_p = jax.random.split(key)

    N, IN_CH, OUT_CH, H, W = 2, 4, 8, 16, 16
    x = jax.random.normal(k_x, (N, IN_CH, H, W), jnp.float32)   # NCHW, like PyTorch
    params = init_outconv_dsc_params(k_p, IN_CH, OUT_CH)

    out = jax.block_until_ready(outconv_dsc_forward(x, params))
    assert out.shape == (N, OUT_CH, H, W), out.shape

    ref = jax.block_until_ready(outconv_dsc_reference(x, params))
    # tolerance loosened: bf16 depthwise intermediate + bf16 MXU operands
    np.testing.assert_allclose(np.asarray(out), np.asarray(ref),
                               rtol=3e-2, atol=3e-2)

    print("KERNEL_OK")
</pallas_src>

<mosaic_0001>
module attributes {stable_mosaic.version = 11 : i64} {
  func.func @_dwconv_stats_kernel(%arg0: i32, %arg1: i32, %arg2: memref<1x1x18x18x128xf32, #tpu.memory_space<vmem>>, %arg3: memref<9x128xf32, #tpu.memory_space<vmem>>, %arg4: memref<1x1x16x16x128xbf16, #tpu.memory_space<vmem>>, %arg5: memref<1x1x8x128xf32, #tpu.memory_space<vmem>>, %arg6: memref<1x1x8x128xf32, #tpu.memory_space<vmem>>) attributes {dimension_semantics = [#tpu.dimension_semantics<parallel>, #tpu.dimension_semantics<parallel>], iteration_bounds = array<i64: 2, 1>, scalar_prefetch = 0 : i64, scratch_operands = 0 : i64, tpu.core_type = #tpu.core_type<tc>, window_params = [{transform_indices = @transform_0, window_bounds = array<i64: 1, 1, 18, 18, 128>}, {pipeline_mode = #tpu.pipeline_mode<synchronous>, transform_indices = @transform_1, window_bounds = array<i64: 9, 128>}, {transform_indices = @transform_2, window_bounds = array<i64: 1, 1, 16, 16, 128>}, {transform_indices = @transform_3, window_bounds = array<i64: 1, 1, 8, 128>}, {transform_indices = @transform_4, window_bounds = array<i64: 1, 1, 8, 128>}]} {
    %c0 = arith.constant 0 : index
    %c0_0 = arith.constant 0 : index
    %c0_1 = arith.constant 0 : index
    %c0_2 = arith.constant 0 : index
    %c0_3 = arith.constant 0 : index
    %0 = vector.load %arg2[%c0, %c0_0, %c0_1, %c0_2, %c0_3] : memref<1x1x18x18x128xf32, #tpu.memory_space<vmem>>, vector<1x1x18x16x128xf32>
    %1 = vector.shape_cast %0 : vector<1x1x18x16x128xf32> to vector<18x16x128xf32>
    %c0_4 = arith.constant 0 : index
    %c0_5 = arith.constant 0 : index
    %c0_6 = arith.constant 0 : index
    %c1 = arith.constant 1 : index
    %c0_7 = arith.constant 0 : index
    %2 = vector.load %arg2[%c0_4, %c0_5, %c0_6, %c1, %c0_7] : memref<1x1x18x18x128xf32, #tpu.memory_space<vmem>>, vector<1x1x18x16x128xf32>
    %3 = vector.shape_cast %2 : vector<1x1x18x16x128xf32> to vector<18x16x128xf32>
    %c0_8 = arith.constant 0 : index
    %c0_9 = arith.constant 0 : index
    %c0_10 = arith.constant 0 : index
    %c2 = arith.constant 2 : index
    %c0_11 = arith.constant 0 : index
    %4 = vector.load %arg2[%c0_8, %c0_9, %c0_10, %c2, %c0_11] : memref<1x1x18x18x128xf32, #tpu.memory_space<vmem>>, vector<1x1x18x16x128xf32>
    %5 = vector.shape_cast %4 : vector<1x1x18x16x128xf32> to vector<18x16x128xf32>
    %cst = arith.constant 0.000000e+00 : f32
    %6 = vector.broadcast %cst : f32 to vector<1x1x128xf32>
    %cst_12 = arith.constant 0.000000e+00 : f32
    %7 = vector.broadcast %cst_12 : f32 to vector<1x1x128xf32>
    %cst_13 = arith.constant 0.000000e+00 : f32
    %8 = vector.broadcast %cst_13 : f32 to vector<8x16x128xf32>
    %9 = vector.extract_strided_slice %1 {offsets = [0, 0, 0], sizes = [8, 16, 128], strides = [1, 1, 1]} : vector<18x16x128xf32> to vector<8x16x128xf32>
    %c0_14 = arith.constant 0 : index
    %c0_15 = arith.constant 0 : index
    %10 = vector.load %arg3[%c0_14, %c0_15] : memref<9x128xf32, #tpu.memory_space<vmem>>, vector<1x128xf32>
    %11 = vector.shape_cast %10 : vector<1x128xf32> to vector<128xf32>
    %12 = vector.shape_cast %11 : vector<128xf32> to vector<1x1x128xf32>
    %13 = vector.broadcast %12 : vector<1x1x128xf32> to vector<8x16x128xf32>
    %14 = arith.mulf %9, %13 : vector<8x16x128xf32>
    %15 = arith.addf %8, %14 : vector<8x16x128xf32>
    %16 = vector.extract_strided_slice %1 {offsets = [1, 0, 0], sizes = [8, 16, 128], strides = [1, 1, 1]} : vector<18x16x128xf32> to vector<8x16x128xf32>
    %c3 = arith.constant 3 : index
    %c0_16 = arith.constant 0 : index
    %17 = vector.load %arg3[%c3, %c0_16] : memref<9x128xf32, #tpu.memory_space<vmem>>, vector<1x128xf32>
    %18 = vector.shape_cast %17 : vector<1x128xf32> to vector<128xf32>
    %19 = vector.shape_cast %18 : vector<128xf32> to vector<1x1x128xf32>
    %20 = vector.broadcast %19 : vector<1x1x128xf32> to vector<8x16x128xf32>
    %21 = arith.mulf %16, %20 : vector<8x16x128xf32>
    %22 = arith.addf %15, %21 : vector<8x16x128xf32>
    %23 = vector.extract_strided_slice %1 {offsets = [2, 0, 0], sizes = [8, 16, 128], strides = [1, 1, 1]} : vector<18x16x128xf32> to vector<8x16x128xf32>
    %c6 = arith.constant 6 : index
    %c0_17 = arith.constant 0 : index
    %24 = vector.load %arg3[%c6, %c0_17] : memref<9x128xf32, #tpu.memory_space<vmem>>, vector<1x128xf32>
    %25 = vector.shape_cast %24 : vector<1x128xf32> to vector<128xf32>
    %26 = vector.shape_cast %25 : vector<128xf32> to vector<1x1x128xf32>
    %27 = vector.broadcast %26 : vector<1x1x128xf32> to vector<8x16x128xf32>
    %28 = arith.mulf %23, %27 : vector<8x16x128xf32>
    %29 = arith.addf %22, %28 : vector<8x16x128xf32>
    %30 = vector.extract_strided_slice %3 {offsets = [0, 0, 0], sizes = [8, 16, 128], strides = [1, 1, 1]} : vector<18x16x128xf32> to vector<8x16x128xf32>
    %c1_18 = arith.constant 1 : index
    %c0_19 = arith.constant 0 : index
    %31 = vector.load %arg3[%c1_18, %c0_19] : memref<9x128xf32, #tpu.memory_space<vmem>>, vector<1x128xf32>
    %32 = vector.shape_cast %31 : vector<1x128xf32> to vector<128xf32>
    %33 = vector.shape_cast %32 : vector<128xf32> to vector<1x1x128xf32>
    %34 = vector.broadcast %33 : vector<1x1x128xf32> to vector<8x16x128xf32>
    %35 = arith.mulf %30, %34 : vector<8x16x128xf32>
    %36 = arith.addf %29, %35 : vector<8x16x128xf32>
    %37 = vector.extract_strided_slice %3 {offsets = [1, 0, 0], sizes = [8, 16, 128], strides = [1, 1, 1]} : vector<18x16x128xf32> to vector<8x16x128xf32>
    %c4 = arith.constant 4 : index
    %c0_20 = arith.constant 0 : index
    %38 = vector.load %arg3[%c4, %c0_20] : memref<9x128xf32, #tpu.memory_space<vmem>>, vector<1x128xf32>
    %39 = vector.shape_cast %38 : vector<1x128xf32> to vector<128xf32>
    %40 = vector.shape_cast %39 : vector<128xf32> to vector<1x1x128xf32>
    %41 = vector.broadcast %40 : vector<1x1x128xf32> to vector<8x16x128xf32>
    %42 = arith.mulf %37, %41 : vector<8x16x128xf32>
    %43 = arith.addf %36, %42 : vector<8x16x128xf32>
    %44 = vector.extract_strided_slice %3 {offsets = [2, 0, 0], sizes = [8, 16, 128], strides = [1, 1, 1]} : vector<18x16x128xf32> to vector<8x16x128xf32>
    %c7 = arith.constant 7 : index
    %c0_21 = arith.constant 0 : index
    %45 = vector.load %arg3[%c7, %c0_21] : memref<9x128xf32, #tpu.memory_space<vmem>>, vector<1x128xf32>
    %46 = vector.shape_cast %45 : vector<1x128xf32> to vector<128xf32>
    %47 = vector.shape_cast %46 : vector<128xf32> to vector<1x1x128xf32>
    %48 = vector.broadcast %47 : vector<1x1x128xf32> to vector<8x16x128xf32>
    %49 = arith.mulf %44, %48 : vector<8x16x128xf32>
    %50 = arith.addf %43, %49 : vector<8x16x128xf32>
    %51 = vector.extract_strided_slice %5 {offsets = [0, 0, 0], sizes = [8, 16, 128], strides = [1, 1, 1]} : vector<18x16x128xf32> to vector<8x16x128xf32>
    %c2_22 = arith.constant 2 : index
    %c0_23 = arith.constant 0 : index
    %52 = vector.load %arg3[%c2_22, %c0_23] : memref<9x128xf32, #tpu.memory_space<vmem>>, vector<1x128xf32>
    %53 = vector.shape_cast %52 : vector<1x128xf32> to vector<128xf32>
    %54 = vector.shape_cast %53 : vector<128xf32> to vector<1x1x128xf32>
    %55 = vector.broadcast %54 : vector<1x1x128xf32> to vector<8x16x128xf32>
    %56 = arith.mulf %51, %55 : vector<8x16x128xf32>
    %57 = arith.addf %50, %56 : vector<8x16x128xf32>
    %58 = vector.extract_strided_slice %5 {offsets = [1, 0, 0], sizes = [8, 16, 128], strides = [1, 1, 1]} : vector<18x16x128xf32> to vector<8x16x128xf32>
    %c5 = arith.constant 5 : index
    %c0_24 = arith.constant 0 : index
    %59 = vector.load %arg3[%c5, %c0_24] : memref<9x128xf32, #tpu.memory_space<vmem>>, vector<1x128xf32>
    %60 = vector.shape_cast %59 : vector<1x128xf32> to vector<128xf32>
    %61 = vector.shape_cast %60 : vector<128xf32> to vector<1x1x128xf32>
    %62 = vector.broadcast %61 : vector<1x1x128xf32> to vector<8x16x128xf32>
    %63 = arith.mulf %58, %62 : vector<8x16x128xf32>
    %64 = arith.addf %57, %63 : vector<8x16x128xf32>
    %65 = vector.extract_strided_slice %5 {offsets = [2, 0, 0], sizes = [8, 16, 128], strides = [1, 1, 1]} : vector<18x16x128xf32> to vector<8x16x128xf32>
    %c8 = arith.constant 8 : index
    %c0_25 = arith.constant 0 : index
    %66 = vector.load %arg3[%c8, %c0_25] : memref<9x128xf32, #tpu.memory_space<vmem>>, vector<1x128xf32>
    %67 = vector.shape_cast %66 : vector<1x128xf32> to vector<128xf32>
    %68 = vector.shape_cast %67 : vector<128xf32> to vector<1x1x128xf32>
    %69 = vector.broadcast %68 : vector<1x1x128xf32> to vector<8x16x128xf32>
    %70 = arith.mulf %65, %69 : vector<8x16x128xf32>
    %71 = arith.addf %64, %70 : vector<8x16x128xf32>
    %72 = arith.truncf %71 : vector<8x16x128xf32> to vector<8x16x128xbf16>
    %c0_26 = arith.constant 0 : index
    %c0_27 = arith.constant 0 : index
    %c0_28 = arith.constant 0 : index
    %c0_29 = arith.constant 0 : index
    %c0_30 = arith.constant 0 : index
    %73 = vector.load %arg4[%c0_26, %c0_27, %c0_28, %c0_29, %c0_30] : memref<1x1x16x16x128xbf16, #tpu.memory_space<vmem>>, vector<1x1x8x16x128xbf16>
    %74 = vector.shape_cast %73 : vector<1x1x8x16x128xbf16> to vector<8x16x128xbf16>
    %75 = vector.shape_cast %72 : vector<8x16x128xbf16> to vector<1x1x8x16x128xbf16>
    tpu.vector_store %arg4[%c0_26, %c0_27, %c0_28, %c0_29, %c0_30], %75 {strides = array<i32>} : memref<1x1x16x16x128xbf16, #tpu.memory_space<vmem>>, vector<1x1x8x16x128xbf16>,
    %76 = arith.extf %72 : vector<8x16x128xbf16> to vector<8x16x128xf32>
    %cst_31 = arith.constant dense<0.000000e+00> : vector<128xf32>
    %77 = vector.multi_reduction <add>, %76, %cst_31 [0, 1] : vector<8x16x128xf32> to vector<128xf32>
    %78 = vector.shape_cast %77 : vector<128xf32> to vector<1x1x128xf32>
    %79 = arith.addf %6, %78 : vector<1x1x128xf32>
    %80 = arith.mulf %76, %76 : vector<8x16x128xf32>
    %cst_32 = arith.constant dense<0.000000e+00> : vector<128xf32>
    %81 = vector.multi_reduction <add>, %80, %cst_32 [0, 1] : vector<8x16x128xf32> to vector<128xf32>
    %82 = vector.shape_cast %81 : vector<128xf32> to vector<1x1x128xf32>
    %83 = arith.addf %7, %82 : vector<1x1x128xf32>
    %cst_33 = arith.constant 0.000000e+00 : f32
    %84 = vector.broadcast %cst_33 : f32 to vector<8x16x128xf32>
    %85 = vector.extract_strided_slice %1 {offsets = [8, 0, 0], sizes = [8, 16, 128], strides = [1, 1, 1]} : vector<18x16x128xf32> to vector<8x16x128xf32>
    %c0_34 = arith.constant 0 : index
    %c0_35 = arith.constant 0 : index
    %86 = vector.load %arg3[%c0_34, %c0_35] : memref<9x128xf32, #tpu.memory_space<vmem>>, vector<1x128xf32>
    %87 = vector.shape_cast %86 : vector<1x128xf32> to vector<128xf32>
    %88 = vector.shape_cast %87 : vector<128xf32> to vector<1x1x128xf32>
    %89 = vector.broadcast %88 : vector<1x1x128xf32> to vector<8x16x128xf32>
    %90 = arith.mulf %85, %89 : vector<8x16x128xf32>
    %91 = arith.addf %84, %90 : vector<8x16x128xf32>
    %92 = vector.extract_strided_slice %1 {offsets = [9, 0, 0], sizes = [8, 16, 128], strides = [1, 1, 1]} : vector<18x16x128xf32> to vector<8x16x128xf32>
    %c3_36 = arith.constant 3 : index
    %c0_37 = arith.constant 0 : index
    %93 = vector.load %arg3[%c3_36, %c0_37] : memref<9x128xf32, #tpu.memory_space<vmem>>, vector<1x128xf32>
    %94 = vector.shape_cast %93 : vector<1x128xf32> to vector<128xf32>
    %95 = vector.shape_cast %94 : vector<128xf32> to vector<1x1x128xf32>
    %96 = vector.broadcast %95 : vector<1x1x128xf32> to vector<8x16x128xf32>
    %97 = arith.mulf %92, %96 : vector<8x16x128xf32>
    %98 = arith.addf %91, %97 : vector<8x16x128xf32>
    %99 = vector.extract_strided_slice %1 {offsets = [10, 0, 0], sizes = [8, 16, 128], strides = [1, 1, 1]} : vector<18x16x128xf32> to vector<8x16x128xf32>
    %c6_38 = arith.constant 6 : index
    %c0_39 = arith.constant 0 : index
    %100 = vector.load %arg3[%c6_38, %c0_39] : memref<9x128xf32, #tpu.memory_space<vmem>>, vector<1x128xf32>
    %101 = vector.shape_cast %100 : vector<1x128xf32> to vector<128xf32>
    %102 = vector.shape_cast %101 : vector<128xf32> to vector<1x1x128xf32>
    %103 = vector.broadcast %102 : vector<1x1x128xf32> to vector<8x16x128xf32>
    %104 = arith.mulf %99, %103 : vector<8x16x128xf32>
    %105 = arith.addf %98, %104 : vector<8x16x128xf32>
    %106 = vector.extract_strided_slice %3 {offsets = [8, 0, 0], sizes = [8, 16, 128], strides = [1, 1, 1]} : vector<18x16x128xf32> to vector<8x16x128xf32>
    %c1_40 = arith.constant 1 : index
    %c0_41 = arith.constant 0 : index
    %107 = vector.load %arg3[%c1_40, %c0_41] : memref<9x128xf32, #tpu.memory_space<vmem>>, vector<1x128xf32>
    %108 = vector.shape_cast %107 : vector<1x128xf32> to vector<128xf32>
    %109 = vector.shape_cast %108 : vector<128xf32> to vector<1x1x128xf32>
    %110 = vector.broadcast %109 : vector<1x1x128xf32> to vector<8x16x128xf32>
    %111 = arith.mulf %106, %110 : vector<8x16x128xf32>
    %112 = arith.addf %105, %111 : vector<8x16x128xf32>
    %113 = vector.extract_strided_slice %3 {offsets = [9, 0, 0], sizes = [8, 16, 128], strides = [1, 1, 1]} : vector<18x16x128xf32> to vector<8x16x128xf32>
    %c4_42 = arith.constant 4 : index
    %c0_43 = arith.constant 0 : index
    %114 = vector.load %arg3[%c4_42, %c0_43] : memref<9x128xf32, #tpu.memory_space<vmem>>, vector<1x128xf32>
    %115 = vector.shape_cast %114 : vector<1x128xf32> to vector<128xf32>
    %116 = vector.shape_cast %115 : vector<128xf32> to vector<1x1x128xf32>
    %117 = vector.broadcast %116 : vector<1x1x128xf32> to vector<8x16x128xf32>
    %118 = arith.mulf %113, %117 : vector<8x16x128xf32>
    %119 = arith.addf %112, %118 : vector<8x16x128xf32>
    %120 = vector.extract_strided_slice %3 {offsets = [10, 0, 0], sizes = [8, 16, 128], strides = [1, 1, 1]} : vector<18x16x128xf32> to vector<8x16x128xf32>
    %c7_44 = arith.constant 7 : index
    %c0_45 = arith.constant 0 : index
    %121 = vector.load %arg3[%c7_44, %c0_45] : memref<9x128xf32, #tpu.memory_space<vmem>>, vector<1x128xf32>
    %122 = vector.shape_cast %121 : vector<1x128xf32> to vector<128xf32>
    %123 = vector.shape_cast %122 : vector<128xf32> to vector<1x1x128xf32>
    %124 = vector.broadcast %123 : vector<1x1x128xf32> to vector<8x16x128xf32>
    %125 = arith.mulf %120, %124 : vector<8x16x128xf32>
    %126 = arith.addf %119, %125 : vector<8x16x128xf32>
    %127 = vector.extract_strided_slice %5 {offsets = [8, 0, 0], sizes = [8, 16, 128], strides = [1, 1, 1]} : vector<18x16x128xf32> to vector<8x16x128xf32>
    %c2_46 = arith.constant 2 : index
    %c0_47 = arith.constant 0 : index
    %128 = vector.load %arg3[%c2_46, %c0_47] : memref<9x128xf32, #tpu.memory_space<vmem>>, vector<1x128xf32>
    %129 = vector.shape_cast %128 : vector<1x128xf32> to vector<128xf32>
    %130 = vector.shape_cast %129 : vector<128xf32> to vector<1x1x128xf32>
    %131 = vector.broadcast %130 : vector<1x1x128xf32> to vector<8x16x128xf32>
    %132 = arith.mulf %127, %131 : vector<8x16x128xf32>
    %133 = arith.addf %126, %132 : vector<8x16x128xf32>
    %134 = vector.extract_strided_slice %5 {offsets = [9, 0, 0], sizes = [8, 16, 128], strides = [1, 1, 1]} : vector<18x16x128xf32> to vector<8x16x128xf32>
    %c5_48 = arith.constant 5 : index
    %c0_49 = arith.constant 0 : index
    %135 = vector.load %arg3[%c5_48, %c0_49] : memref<9x128xf32, #tpu.memory_space<vmem>>, vector<1x128xf32>
    %136 = vector.shape_cast %135 : vector<1x128xf32> to vector<128xf32>
    %137 = vector.shape_cast %136 : vector<128xf32> to vector<1x1x128xf32>
    %138 = vector.broadcast %137 : vector<1x1x128xf32> to vector<8x16x128xf32>
    %139 = arith.mulf %134, %138 : vector<8x16x128xf32>
    %140 = arith.addf %133, %139 : vector<8x16x128xf32>
    %141 = vector.extract_strided_slice %5 {offsets = [10, 0, 0], sizes = [8, 16, 128], strides = [1, 1, 1]} : vector<18x16x128xf32> to vector<8x16x128xf32>
    %c8_50 = arith.constant 8 : index
    %c0_51 = arith.constant 0 : index
    %142 = vector.load %arg3[%c8_50, %c0_51] : memref<9x128xf32, #tpu.memory_space<vmem>>, vector<1x128xf32>
    %143 = vector.shape_cast %142 : vector<1x128xf32> to vector<128xf32>
    %144 = vector.shape_cast %143 : vector<128xf32> to vector<1x1x128xf32>
    %145 = vector.broadcast %144 : vector<1x1x128xf32> to vector<8x16x128xf32>
    %146 = arith.mulf %141, %145 : vector<8x16x128xf32>
    %147 = arith.addf %140, %146 : vector<8x16x128xf32>
    %148 = arith.truncf %147 : vector<8x16x128xf32> to vector<8x16x128xbf16>
    %c0_52 = arith.constant 0 : index
    %c0_53 = arith.constant 0 : index
    %c8_54 = arith.constant 8 : index
    %c0_55 = arith.constant 0 : index
    %c0_56 = arith.constant 0 : index
    %149 = vector.load %arg4[%c0_52, %c0_53, %c8_54, %c0_55, %c0_56] : memref<1x1x16x16x128xbf16, #tpu.memory_space<vmem>>, vector<1x1x8x16x128xbf16>
    %150 = vector.shape_cast %149 : vector<1x1x8x16x128xbf16> to vector<8x16x128xbf16>
    %151 = vector.shape_cast %148 : vector<8x16x128xbf16> to vector<1x1x8x16x128xbf16>
    tpu.vector_store %arg4[%c0_52, %c0_53, %c8_54, %c0_55, %c0_56], %151 {strides = array<i32>} : memref<1x1x16x16x128xbf16, #tpu.memory_space<vmem>>, vector<1x1x8x16x128xbf16>,
    %152 = arith.extf %148 : vector<8x16x128xbf16> to vector<8x16x128xf32>
    %cst_57 = arith.constant dense<0.000000e+00> : vector<128xf32>
    %153 = vector.multi_reduction <add>, %152, %cst_57 [0, 1] : vector<8x16x128xf32> to vector<128xf32>
    %154 = vector.shape_cast %153 : vector<128xf32> to vector<1x1x128xf32>
    %155 = arith.addf %79, %154 : vector<1x1x128xf32>
    %156 = arith.mulf %152, %152 : vector<8x16x128xf32>
    %cst_58 = arith.constant dense<0.000000e+00> : vector<128xf32>
    %157 = vector.multi_reduction <add>, %156, %cst_58 [0, 1] : vector<8x16x128xf32> to vector<128xf32>
    %158 = vector.shape_cast %157 : vector<128xf32> to vector<1x1x128xf32>
    %159 = arith.addf %83, %158 : vector<1x1x128xf32>
    %160 = vector.shape_cast %155 : vector<1x1x128xf32> to vector<1x1x1x128xf32>
    %161 = vector.shape_cast %160 : vector<1x1x1x128xf32> to vector<1x1x1x128xf32>
    %162 = vector.broadcast %161 : vector<1x1x1x128xf32> to vector<1x1x8x128xf32>
    %c0_59 = arith.constant 0 : index
    %c0_60 = arith.constant 0 : index
    %c0_61 = arith.constant 0 : index
    %c0_62 = arith.constant 0 : index
    %163 = vector.load %arg5[%c0_59, %c0_60, %c0_61, %c0_62] : memref<1x1x8x128xf32, #tpu.memory_space<vmem>>, vector<1x1x8x128xf32>
    tpu.vector_store %arg5[%c0_59, %c0_60, %c0_61, %c0_62], %162 {strides = array<i32>} : memref<1x1x8x128xf32, #tpu.memory_space<vmem>>, vector<1x1x8x128xf32>,
    %164 = vector.shape_cast %159 : vector<1x1x128xf32> to vector<1x1x1x128xf32>
    %165 = vector.shape_cast %164 : vector<1x1x1x128xf32> to vector<1x1x1x128xf32>
    %166 = vector.broadcast %165 : vector<1x1x1x128xf32> to vector<1x1x8x128xf32>
    %c0_63 = arith.constant 0 : index
    %c0_64 = arith.constant 0 : index
    %c0_65 = arith.constant 0 : index
    %c0_66 = arith.constant 0 : index
    %167 = vector.load %arg6[%c0_63, %c0_64, %c0_65, %c0_66] : memref<1x1x8x128xf32, #tpu.memory_space<vmem>>, vector<1x1x8x128xf32>
    tpu.vector_store %arg6[%c0_63, %c0_64, %c0_65, %c0_66], %166 {strides = array<i32>} : memref<1x1x8x128xf32, #tpu.memory_space<vmem>>, vector<1x1x8x128xf32>,
    return
  }
  func.func @transform_0(%arg0: i32, %arg1: i32) -> (i32, i32, i32, i32, i32) {
    %c0_i32 = arith.constant 0 : i32
    %c0_i32_0 = arith.constant 0 : i32
    %c0_i32_1 = arith.constant 0 : i32
    %c0_i32_2 = arith.constant 0 : i32
    return %arg0, %arg1, %c0_i32, %c0_i32_0, %c0_i32_1 : i32, i32, i32, i32, i32
  }
  func.func @transform_1(%arg0: i32, %arg1: i32) -> (i32, i32) {
    %c0_i32 = arith.constant 0 : i32
    %c0_i32_0 = arith.constant 0 : i32
    %c0_i32_1 = arith.constant 0 : i32
    return %c0_i32, %c0_i32_0 : i32, i32
  }
  func.func @transform_2(%arg0: i32, %arg1: i32) -> (i32, i32, i32, i32, i32) {
    %c0_i32 = arith.constant 0 : i32
    %c0_i32_0 = arith.constant 0 : i32
    %c0_i32_1 = arith.constant 0 : i32
    %c0_i32_2 = arith.constant 0 : i32
    return %arg0, %arg1, %c0_i32, %c0_i32_0, %c0_i32_1 : i32, i32, i32, i32, i32
  }
  func.func @transform_3(%arg0: i32, %arg1: i32) -> (i32, i32, i32, i32) {
    %c0_i32 = arith.constant 0 : i32
    %c0_i32_0 = arith.constant 0 : i32
    %c0_i32_1 = arith.constant 0 : i32
    return %arg0, %arg1, %c0_i32, %c0_i32_0 : i32, i32, i32, i32
  }
  func.func @transform_4(%arg0: i32, %arg1: i32) -> (i32, i32, i32, i32) {
    %c0_i32 = arith.constant 0 : i32
    %c0_i32_0 = arith.constant 0 : i32
    %c0_i32_1 = arith.constant 0 : i32
    return %arg0, %arg1, %c0_i32, %c0_i32_0 : i32, i32, i32, i32
  }
}

</mosaic_0001>

<bundles_post_ra>
// kernel: tpu_custom_call.1
= control target key start
LH: loop header
LB: loop body
LE: loop exit
PB: predicated region body
PF: predicated region fallthrough
CT: control target
= control target key end

     0   :  { %10 = vsyncpa [#allocation3], 0  ;;  %s3336_s0 = inlined_call_operand.hbm [shape: f32[2,1,18,18,128], index: 0, kind: input, shape index: {}]   ;;  %s3337_s1 = inlined_call_operand.hbm [shape: f32[9,128], index: 1, kind: input, shape index: {}]   ;;  %s3338_s2 = inlined_call_operand.hbm [shape: bf16[2,1,16,16,128], index: 2, kind: output, shape index: {0}]   ;;  %s3339_s3 = inlined_call_operand.hbm [shape: f32[2,1,8,128], index: 3, kind: output, shape index: {1}]   ;;  %s3340_s4 = inlined_call_operand.hbm [shape: f32[2,1,8,128], index: 4, kind: output, shape index: {2}]  }
   0x1   :  { %12 = vsyncpa [#allocation3 + $0x1], 0 }
   0x2   :  { %13 = vsyncpa [#allocation6], 0 }
   0x3   :  { %14 = vsyncpa [#allocation4], 0 }
   0x4   :  { %16 = vsyncpa [#allocation4 + $0x1], 0 }
   0x5   :  { %17 = vsyncpa [#allocation9], 0 }
   0x6   :  { %19 = vsyncpa [#allocation9 + $0x1], 0  ;;  %s2118_s15 = smov 0   ;;  %s2120_s16 = smov 0  }
   0x7   :  { %s2122_s17 = smov 0   ;;  %s2124_s18 = smov 0  }
   0x8   :  { %s2126_s19 = smov 0   ;;  %s2128_s20 = smov 0  }
   0x9 LB: > { %s2149_s21 = sadd.s32 4294967295, %s2082_s20   ;;  %s3344_s22 = sadd.s32 4294967294, %s2082_s20   ;;  %s2082_s20 = sphi %s2128_s20, %s25_s20   ;;  %s2078_s19 = sphi %s2126_s19, %s3501_s19   ;;  %s2074_s18 = sphi %s2124_s18, %s3500_s18   ;;  %s2070_s17 = sphi %s2122_s17, %s3499_s17   ;;  %s2066_s16 = sphi %s2120_s16, %s3498_s16   ;;  %s2062_s15 = sphi %s2118_s15, %s3497_s15  }
   0xa   : > { %p59_p0 = scmp.ne.s32.totalorder %s2066_s16, %s2062_s15  ;;  %p3341_p1 = scmp.eq.s32.totalorder %s2149_s21, 0 }
   0xb   : > { %p112_p3 = scmp.eq.s32.totalorder %s3344_s22, 1  ;;  %p1576_p5 = scmp.ge.s32.totalorder %s2082_s20, 1 }
   0xc   : > { %p2160_p4 = por %p3341_p1, %p59_p0  ;;  %p175_p7 = scmp.lt.s32.totalorder %s2082_s20, 3 }
   0xd   : > { %p2165_p6 = por %p112_p3, %p59_p0  ;;  %s2084_s26 = smov [#allocation5]  }
   0xe   : > { %s3399_s23 = scalar_select %p2160_p4, 1, 0 }
   0xf   : > { %s3400_s24 = scalar_select %p2165_p6, 1, 0 }
  0x10   : > { %p2170_p8 = pnand %p1576_p5, %p175_p7  ;;  %s187_s27 = sshll.u32 %s2084_s26, 4  ;;  %s188_s27 = int_to_ptr.vmem [resolvable:$true] %s187_s27 }
  0x11   : > { %s37_s29 = sadd.s32 1, %s2078_s19  ;;  %s1878_s6 = scalar_lea.hbm %s3337_s1, 256 }
  0x12   : > { %s3401_s25 = scalar_select %p2170_p8, 1, 0 }
  0x13   : > { %p1803_p9 = pneg %p2170_p8  ;;  %p1879_p12 = scmp.ne.s32.totalorder %s3337_s1, %s1878_s6 }
  0x14   : > { %p1885_p5 = scmp.lt.u32.totalorder %s1878_s6, %s3337_s1 }
  0x15   : > { %p2179_p11 = pnand %p1803_p9, %p3341_p1 }
  0x17   : > { %p1880_p13 = pneg %p2179_p11 }
  0x19   : > { %p1881_p0 = pnand %p1880_p13, %p1879_p12 }
  0x1b   : > { %p1882_p3 = pneg %p1881_p0 }
  0x1d   : > { %p1887_p7 = pnand %p1885_p5, %p1882_p3 }
  0x1f   : > { %1890 = shalt.err (!%p1887_p7)
}
  0x20   : > { %s1891_s11 = scalar_lea.vmem %s188_s27, 256  ;;  %p1899_p2 = scmp.lt.s32.totalorder %s188_s27, %s188_s27 }
  0x21   : > { %p1892_p9 = scmp.ne.s32.totalorder %s188_s27, %s1891_s11  ;;  %p1900_p6 = scmp.lt.s32.totalorder %s1891_s11, %s1891_s11 }
  0x23   : > { %p1894_p10 = pnand %p1892_p9, %p1880_p13  ;;  %p1901_p4 = por %p1900_p6, %p1899_p2 }
  0x25   : > { %p1895_p1 = pneg %p1894_p10 }
  0x27   : > { %p1902_p8 = pnand %p1901_p4, %p1895_p1 }
  0x29   : > { %1905 = shalt.err (!%p1902_p8)
}
  0x2a   : > { %s2085_s12 = smov 128   ;;  %s2086_s13 = smov 8  }
  0x2b   : > { %1806 = dma.hbm_to_vmem [thread:$0]  (!%p2179_p11), %s3337_s1, 256, %s188_s27, [#allocation6], %s2085_s12, %s2085_s12, %s2086_s13  }
  0x2c   : > { %p39_p1 = scmp.ge.s32.totalorder %s37_s29, 2  ;;  %s46_s30 = sadd.s32 1, %s2070_s17 }
  0x2d   : > { %p53_p2 = scmp.ne.s32.totalorder %s2070_s17, %s2066_s16  ;;  %p54_p4 = scmp.eq.s32.totalorder %s2082_s20, 0 }
  0x2e   : > { %s3503_s29 = smov (%p39_p1, %s37_s29), 0  ;;  %p3403_p8 = scmp.eq.s32.totalorder %s2149_s21, 1 }
  0x2f   : > { %p55_p6 = por %p54_p4, %p53_p2  ;;  %s41_s28 = ssub.s32 %s2078_s19, %s3503_s29 }
  0x30   : > { %p2211_p10 = por %p3403_p8, %p53_p2  ;;  %p1822_p12 = scmp.lt.s32.totalorder %s2082_s20, 2 }
  0x31   : > { %p44_p13 = scmp.eq.s32.totalorder %s41_s28, 0  ;;  %s201_s6 = sand.u32 1, %s2070_s17  }
  0x32   : > { %s1788_s7 = smul.u32 432, %s201_s6  ;;  %p2223_p11 = pnand %p1822_p12, %p55_p6 }
  0x33   : > { %s2220_s8 = scalar_select %p44_p13, %s2070_s17, %s46_s30  }
  0x34   : > { %s1789_s27 = smul.u32 6912, %s2078_s19  ;;  %s205_s9 = scalar_lea.vmem [#allocation2], %s1788_s7 }
  0x35   : > { %s214_s10 = sshll.u32 %s205_s9, 4  ;;  %s2234_s30 = scalar_lea.sflag [#allocation3], %s201_s6  ;;  %s2232_s10 = int_to_ptr.vmem [resolvable:$true] %s214_s10 }
  0x36   : > { %s2230_s22 = scalar_lea.hbm %s3336_s0, %s1789_s27  ;;  %p1908_p3 = pneg %p2223_p11 }
  0x37   : > { %s1906_s28 = scalar_lea.hbm %s2230_s22, 6912  ;;  %s1911_s27 = scalar_lea.hbm %s3336_s0, 13824 }
  0x38   : > { %p1907_p0 = scmp.ne.s32.totalorder %s2230_s22, %s1906_s28  ;;  %p1912_p9 = scmp.lt.u32.totalorder %s2230_s22, %s3336_s0 }
  0x39   : > { %p1913_p1 = scmp.lt.u32.totalorder %s1911_s27, %s1906_s28  ;;  %p1915_p4 = scmp.lt.u32.totalorder %s1906_s28, %s2230_s22 }
  0x3a   : > { %p1909_p5 = pnand %p1908_p3, %p1907_p0 }
  0x3b   : > { %p1914_p2 = por %p1913_p1, %p1912_p9 }
  0x3c   : > { %p1910_p7 = pneg %p1909_p5 }
  0x3d   : > { %p1916_p6 = por %p1915_p4, %p1914_p2 }
  0x3f   : > { %p1917_p8 = pnand %p1916_p6, %p1910_p7 }
  0x41   : > { %1920 = shalt.err (!%p1917_p8)
}
  0x42   : > { %s1921_s6 = scalar_lea.vmem %s2232_s10, 6912  ;;  %s2087_s7 = smov [#allocation2]  }
  0x43   : > { %p1922_p12 = scmp.ne.s32.totalorder %s2232_s10, %s1921_s6  ;;  %s1926_s9 = sshll.u32 %s2087_s7, 4  ;;  %s1927_s9 = int_to_ptr.vmem [resolvable:$false] %s1926_s9 }
  0x44   : > { %s1928_s14 = scalar_lea.vmem %s1927_s9, 13824  ;;  %p1929_p5 = scmp.lt.s32.totalorder %s2232_s10, %s1927_s9 }
  0x45   : > { %p1924_p13 = pnand %p1922_p12, %p1908_p3  ;;  %p1930_p9 = scmp.lt.s32.totalorder %s1928_s14, %s1921_s6 }
  0x47   : > { %p1925_p0 = pneg %p1924_p13  ;;  %p1931_p1 = por %p1930_p9, %p1929_p5 }
  0x49   : > { %p1932_p2 = pnand %p1931_p1, %p1925_p0 }
  0x4b   : > { %1935 = shalt.err (!%p1932_p2)
}
  0x4c   : > { %1810 = dma.hbm_to_vmem [thread:$0]  (!%p2223_p11), %s2230_s22, 6912, %s2232_s10, %s2234_s30, %s2085_s12, %s2085_s12, %s2086_s13  }
  0x4d   : > { %p3406_p3 = scmp.ne.s32.totalorder %s3401_s25, 0 }
  0x4f   : > { %226 = sbr.rel (%p3406_p3) target bundleno = 346 (0x15a), region = 28 }
  0x56   : > { %s2268_s28 = sand.u32 1, %s2066_s16   ;;  %p3407_p7 = scmp.ne.s32.totalorder %s3399_s23, 0 }
  0x57   : > { %s1790_s27 = smul.u32 432, %s2268_s28  ;;  %s229_s26 = scalar_lea.sflag [#allocation3], %s2268_s28 }
  0x59   : > { %s2272_s6 = scalar_lea.vmem [#allocation2], %s1790_s27 }
  0x5a   : > { %2045 = dma.done.wait (%p3407_p7), %s229_s26, 6912  }
  0x5b   : > { %2047 = vsyncadd (%p3407_p7), %s229_s26, 4294960384  ;;  %p3408_p11 = scmp.eq.s32.totalorder %s2149_s21, 0 }
  0x5d   : > { %2049 = dma.done.wait (%p3408_p11), [#allocation6], 256   ;;  %p3409_p4 = pmov %p3408_p11 }
  0x5e   : > { %v271_v0 = vld [vmem:[%s2272_s6] sm:$0xff]  ;;  %v272_v1 = vld [vmem:[%s2272_s6 + $0x8] sm:$0xff]  ;;  %v273_v2 = vld [vmem:[%s2272_s6 + $0x18] sm:$0xff]  ;;  %s1582_s22 = sshll.u32 %s2268_s28, 7  ;;  %s1692_s25 = sshll.u32 %s2074_s18, 11 }
  0x5f   : > { %2051 = vsyncadd (%p3409_p4), [#allocation6], 4294967040  ;;  %v274_v3 = vld [vmem:[%s2272_s6 + $0x20] sm:$0xff]  ;;  %v2287_v4 = vld [vmem:[%s2272_s6 + $0x30] sm:$0xff]  ;;  %s2706_s23 = scalar_lea.vmem [#allocation7], %s1582_s22  ;;  %s3160_s11 = scalar_lea.hbm %s3338_s2, %s1692_s25 }
  0x60   : > { %v2290_v5 = vld [vmem:[%s2272_s6 + $0x38] sm:$0xff]  ;;  %v2293_v6 = vld [vmem:[%s2272_s6 + $0x48] sm:$0xff]  ;;  %v2296_v7 = vld [vmem:[%s2272_s6 + $0x50] sm:$0xff]  ;;  %s1386_s12 = sshll.u32 %s2706_s23, 4  ;;  %s1361_s30 = scalar_lea.sflag [#allocation4], %s2268_s28  ;;  %s3162_s12 = int_to_ptr.vmem [resolvable:$true] %s1386_s12 }
  0x61   : > { %v2298_v8 = vld [vmem:[#allocation5] ss:$0 sm:$0xff]  ;;  %v2304_v10 = vld [vmem:[%s2272_s6 + $0x68] sm:$0xff]  ;;  %v2307_v11 = vld [vmem:[%s2272_s6 + $0x78] sm:$0xff]  ;;  %s1936_s7 = scalar_lea.vmem %s3162_s12, 2048  ;;  %s2088_s9 = smov [#allocation7]  }
  0x62   : > { %3410 = vst [vmem:[#allocation15_spill] sm:$0xff] %v2298_v8  ;;  %v2301_v9 = vld [vmem:[%s2272_s6 + $0x60] sm:$0xff]  ;;  %v384_v12 = vmul.f32 %v2298_v8, %v271_v0  ;;  %v385_v13 = vmul.f32 %v2298_v8, %v272_v1  ;;  %v386_v14 = vmul.f32 %v2298_v8, %v273_v2  ;;  %v387_v15 = vmul.f32 %v2298_v8, %v274_v3  ;;  %v283_v17 = vld [vmem:[%s2272_s6 + $0x90] sm:$0xff]  ;;  %v284_v23 = vld [vmem:[%s2272_s6 + $0x98] sm:$0xff]  ;;  %p1937_p6 = scmp.ne.s32.totalorder %s3162_s12, %s1936_s7  ;;  %s1940_s14 = sshll.u32 %s2088_s9, 4  ;;  %s1941_s14 = int_to_ptr.vmem [resolvable:$false] %s1940_s14 }
  0x63   : > { %v282_v16 = vld [vmem:[%s2272_s6 + $0x80] sm:$0xff]  ;;  %v388_v18 = vmul.f32 %v2298_v8, %v2287_v4  ;;  %v389_v19 = vmul.f32 %v2298_v8, %v2290_v5  ;;  %v390_v20 = vmul.f32 %v2298_v8, %v2293_v6  ;;  %v391_v21 = vmul.f32 %v2298_v8, %v2296_v7  ;;  %v285_v24 = vld [vmem:[%s2272_s6 + $0xa8] sm:$0xff]  ;;  %v286_v25 = vld [vmem:[%s2272_s6 + $0xb0] sm:$0xff]  ;;  %s1942_s27 = scalar_lea.vmem %s1941_s14, 4096  ;;  %p1943_p13 = scmp.lt.s32.totalorder %s3162_s12, %s1941_s14 }
  0x64   : > { %v2323_v22 = vld [vmem:[#allocation5 + $0x3] ss:$0 sm:$0xff]  ;;  %v392_v26 = vmul.f32 %v2298_v8, %v2301_v9  ;;  %v393_v27 = vmul.f32 %v2298_v8, %v2304_v10  ;;  %v394_v28 = vmul.f32 %v2298_v8, %v2307_v11  ;;  %v395_v29 = vmul.f32 %v2298_v8, %v282_v16  ;;  %v2357_v43 = vld [vmem:[%s2272_s6 + $0xc8] sm:$0xff]  ;;  %v2370_v60 = vld [vmem:[#allocation5 + $0x6] ss:$0 sm:$0xff]  ;;  %p1938_p8 = pnand %p1937_p6, %p2211_p10  ;;  %p1944_p0 = scmp.lt.s32.totalorder %s1942_s27, %s1936_s7 }
  0x65   : > { %3411 = vst [vmem:[#allocation16_spill] sm:$0xff] %v2323_v22  ;;  %v396_v30 = vmul.f32 %v2298_v8, %v283_v17  ;;  %v397_v31 = vmul.f32 %v2298_v8, %v284_v23  ;;  %v398_v32 = vmul.f32 %v2298_v8, %v285_v24  ;;  %v399_v33 = vmul.f32 %v2298_v8, %v286_v25  ;;  %v2354_v42 = vld [vmem:[%s2272_s6 + $0xc0] sm:$0xff] }
  0x66   : > { %v421_v34 = vmul.f32 %v2323_v22, %v273_v2  ;;  %v422_v35 = vmul.f32 %v2323_v22, %v274_v3  ;;  %v423_v36 = vmul.f32 %v2323_v22, %v2287_v4  ;;  %v424_v37 = vmul.f32 %v2323_v22, %v2290_v5  ;;  %3412 = vst [vmem:[#allocation17_spill] sm:$0xff] %v2357_v43  ;;  %p1939_p12 = pneg %p1938_p8  ;;  %p1945_p5 = por %p1944_p0, %p1943_p13 }
  0x67   : > { %v425_v38 = vmul.f32 %v2323_v22, %v2293_v6  ;;  %v426_v39 = vmul.f32 %v2323_v22, %v2296_v7  ;;  %v427_v40 = vmul.f32 %v2323_v22, %v2301_v9  ;;  %v428_v41 = vmul.f32 %v2323_v22, %v2304_v10  ;;  %3413 = vst [vmem:[#allocation18_spill] sm:$0xff] %v2370_v60 }
  0x68   : > { %v429_v44 = vmul.f32 %v2323_v22, %v2307_v11  ;;  %v430_v45 = vmul.f32 %v2323_v22, %v282_v16  ;;  %v431_v46 = vmul.f32 %v2323_v22, %v283_v17  ;;  %v432_v47 = vmul.f32 %v2323_v22, %v284_v23  ;;  %p1946_p9 = pnand %p1945_p5, %p1939_p12 }
  0x69   : > { %v433_v48 = vmul.f32 %v2323_v22, %v285_v24  ;;  %v434_v49 = vmul.f32 %v2323_v22, %v286_v25  ;;  %v435_v50 = vmul.f32 %v2323_v22, %v2354_v42  ;;  %v436_v51 = vmul.f32 %v2323_v22, %v2357_v43 }
  0x6a   : > { %v437_v52 = vadd.f32 %v421_v34, %v384_v12  ;;  %v438_v53 = vadd.f32 %v422_v35, %v385_v13  ;;  %v439_v54 = vadd.f32 %v423_v36, %v386_v14  ;;  %v440_v55 = vadd.f32 %v424_v37, %v387_v15  ;;  %v2409_v36 = vld [vmem:[#allocation5 + $0x1] ss:$0 sm:$0xff] }
  0x6b   : > { %v441_v56 = vadd.f32 %v425_v38, %v388_v18  ;;  %v442_v57 = vadd.f32 %v426_v39, %v389_v19  ;;  %v443_v58 = vadd.f32 %v427_v40, %v390_v20  ;;  %v444_v59 = vadd.f32 %v428_v41, %v391_v21  ;;  %3416 = vst [vmem:[#allocation21_spill] sm:$0xff] %v2409_v36  ;;  %v2412_v41 = vld [vmem:[%s2272_s6 + $0x31] sm:$0xff] }
  0x6c   : > { %v445_v61 = vadd.f32 %v429_v44, %v392_v26  ;;  %v446_v62 = vadd.f32 %v430_v45, %v393_v27  ;;  %v447_v63 = vadd.f32 %v431_v46, %v394_v28  ;;  %v448_v0 = vadd.f32 %v432_v47, %v395_v29  ;;  %v307_v28 = vld [vmem:[%s2272_s6 + $0x1] sm:$0xff]  ;;  %v2415_v44 = vld [vmem:[%s2272_s6 + $0x39] sm:$0xff]  ;;  %v2418_v45 = vld [vmem:[%s2272_s6 + $0x49] sm:$0xff] }
  0x6d   : > { %v449_v1 = vadd.f32 %v433_v48, %v396_v30  ;;  %v450_v2 = vadd.f32 %v434_v49, %v397_v31  ;;  %v451_v3 = vadd.f32 %v435_v50, %v398_v32  ;;  %v452_v22 = vadd.f32 %v436_v51, %v399_v33  ;;  %v309_v30 = vld [vmem:[%s2272_s6 + $0x19] sm:$0xff]  ;;  %v310_v31 = vld [vmem:[%s2272_s6 + $0x21] sm:$0xff]  ;;  %v2421_v50 = vld [vmem:[%s2272_s6 + $0x51] sm:$0xff] }
  0x6e   : > { %v458_v12 = vmul.f32 %v2370_v60, %v2287_v4  ;;  %v459_v13 = vmul.f32 %v2370_v60, %v2290_v5  ;;  %v460_v14 = vmul.f32 %v2370_v60, %v2293_v6  ;;  %v461_v15 = vmul.f32 %v2370_v60, %v2296_v7  ;;  %v2388_v5 = vld [vmem:[%s2272_s6 + $0xd8] sm:$0xff]  ;;  %v2391_v6 = vld [vmem:[%s2272_s6 + $0xe0] sm:$0xff] }
  0x6f   : > { %v462_v18 = vmul.f32 %v2370_v60, %v2301_v9  ;;  %v463_v19 = vmul.f32 %v2370_v60, %v2304_v10  ;;  %v464_v4 = vmul.f32 %v2370_v60, %v2307_v11  ;;  %v465_v20 = vmul.f32 %v2370_v60, %v282_v16  ;;  %3414 = vst [vmem:[#allocation19_spill] sm:$0xff] %v2388_v5  ;;  %v2424_v51 = vld [vmem:[%s2272_s6 + $0x61] sm:$0xff] }
  0x70   : > { %3415 = vst [vmem:[#allocation20_spill] sm:$0xff] %v2391_v6  ;;  %v466_v7 = vmul.f32 %v2370_v60, %v283_v17  ;;  %v467_v21 = vmul.f32 %v2370_v60, %v284_v23  ;;  %v468_v9 = vmul.f32 %v2370_v60, %v285_v24  ;;  %v469_v26 = vmul.f32 %v2370_v60, %v286_v25  ;;  %v308_v17 = vld [vmem:[%s2272_s6 + $0x9] sm:$0xff] }
  0x71   : > { %v470_v10 = vmul.f32 %v2370_v60, %v2354_v42  ;;  %v471_v11 = vmul.f32 %v2370_v60, %v2357_v43  ;;  %v472_v16 = vmul.f32 %v2370_v60, %v2388_v5  ;;  %v473_v27 = vmul.f32 %v2370_v60, %v2391_v6 }
  0x72   : > { %v474_v23 = vadd.f32 %v458_v12, %v437_v52  ;;  %v475_v24 = vadd.f32 %v459_v13, %v438_v53  ;;  %v476_v25 = vadd.f32 %v460_v14, %v439_v54  ;;  %v477_v29 = vadd.f32 %v461_v15, %v440_v55  ;;  %v2427_v52 = vld [vmem:[%s2272_s6 + $0x69] sm:$0xff] }
  0x73   : > { %v478_v32 = vadd.f32 %v462_v18, %v441_v56  ;;  %v479_v33 = vadd.f32 %v463_v19, %v442_v57  ;;  %v480_v34 = vadd.f32 %v464_v4, %v443_v58  ;;  %v481_v35 = vadd.f32 %v465_v20, %v444_v59  ;;  %v2434_v57 = vld [vmem:[%s2272_s6 + $0x79] sm:$0xff]  ;;  %v2437_v58 = vld [vmem:[%s2272_s6 + $0x81] sm:$0xff] }
  0x74   : > { %v482_v37 = vadd.f32 %v466_v7, %v445_v61  ;;  %v483_v38 = vadd.f32 %v467_v21, %v446_v62  ;;  %v484_v39 = vadd.f32 %v468_v9, %v447_v63  ;;  %v485_v40 = vadd.f32 %v469_v26, %v448_v0  ;;  %v2451_v0 = vld [vmem:[%s2272_s6 + $0x99] sm:$0xff] }
  0x75   : > { %v486_v46 = vadd.f32 %v470_v10, %v449_v1  ;;  %v487_v47 = vadd.f32 %v471_v11, %v450_v2  ;;  %v488_v48 = vadd.f32 %v472_v16, %v451_v3  ;;  %v489_v49 = vadd.f32 %v473_v27, %v452_v22  ;;  %v2440_v22 = vld [vmem:[%s2272_s6 + $0x91] sm:$0xff]  ;;  %v2454_v1 = vld [vmem:[%s2272_s6 + $0xa9] sm:$0xff] }
  0x76   : > { %v495_v53 = vmul.f32 %v2409_v36, %v307_v28  ;;  %v496_v54 = vmul.f32 %v2409_v36, %v308_v17  ;;  %v497_v55 = vmul.f32 %v2409_v36, %v309_v30  ;;  %v498_v56 = vmul.f32 %v2409_v36, %v310_v31  ;;  %v2457_v2 = vld [vmem:[%s2272_s6 + $0xb1] sm:$0xff] }
  0x77   : > { %v499_v59 = vmul.f32 %v2409_v36, %v2412_v41  ;;  %v500_v61 = vmul.f32 %v2409_v36, %v2415_v44  ;;  %v501_v62 = vmul.f32 %v2409_v36, %v2418_v45  ;;  %v502_v63 = vmul.f32 %v2409_v36, %v2421_v50  ;;  %v2475_v27 = vld [vmem:[#allocation5 + $0x4] ss:$0 sm:$0xff] }
  0x78   : > { %v503_v3 = vmul.f32 %v2409_v36, %v2424_v51  ;;  %v504_v12 = vmul.f32 %v2409_v36, %v2427_v52  ;;  %v505_v13 = vmul.f32 %v2409_v36, %v2434_v57  ;;  %v506_v14 = vmul.f32 %v2409_v36, %v2437_v58  ;;  %3417 = vst [vmem:[#allocation22_spill] sm:$0xff] %v2475_v27 }
  0x79   : > { %v507_v15 = vmul.f32 %v2409_v36, %v2440_v22  ;;  %v508_v18 = vmul.f32 %v2409_v36, %v2451_v0  ;;  %v509_v19 = vmul.f32 %v2409_v36, %v2454_v1  ;;  %v510_v4 = vmul.f32 %v2409_v36, %v2457_v2 }
  0x7a   : > { %v511_v20 = vadd.f32 %v495_v53, %v474_v23  ;;  %v512_v7 = vadd.f32 %v496_v54, %v475_v24  ;;  %v513_v21 = vadd.f32 %v497_v55, %v476_v25  ;;  %v514_v9 = vadd.f32 %v498_v56, %v477_v29 }
  0x7b   : > { %v515_v26 = vadd.f32 %v499_v59, %v478_v32  ;;  %v516_v10 = vadd.f32 %v500_v61, %v479_v33  ;;  %v517_v11 = vadd.f32 %v501_v62, %v480_v34  ;;  %v518_v16 = vadd.f32 %v502_v63, %v481_v35  ;;  %v2492_v35 = vld [vmem:[%s2272_s6 + $0xc1] sm:$0xff] }
  0x7c   : > { %v519_v28 = vadd.f32 %v503_v3, %v482_v37  ;;  %v520_v17 = vadd.f32 %v504_v12, %v483_v38  ;;  %v521_v60 = vadd.f32 %v505_v13, %v484_v39  ;;  %v522_v6 = vadd.f32 %v506_v14, %v485_v40  ;;  %3418 = vst [vmem:[#allocation23_spill] sm:$0xff] %v2492_v35  ;;  %v2513_v3 = vld [vmem:[#allocation5 + $0x7] ss:$0 sm:$0xff] }
  0x7d   : > { %v523_v5 = vadd.f32 %v507_v15, %v486_v46  ;;  %v524_v43 = vadd.f32 %v508_v18, %v487_v47  ;;  %v525_v8 = vadd.f32 %v509_v19, %v488_v48  ;;  %v526_v36 = vadd.f32 %v510_v4, %v489_v49  ;;  %3420 = vst [vmem:[#allocation25_spill] sm:$0xff] %v2513_v3 }
  0x7e   : > { %v532_v23 = vmul.f32 %v2475_v27, %v309_v30  ;;  %v533_v24 = vmul.f32 %v2475_v27, %v310_v31  ;;  %v534_v25 = vmul.f32 %v2475_v27, %v2412_v41  ;;  %v535_v29 = vmul.f32 %v2475_v27, %v2415_v44  ;;  %v2495_v31 = vld [vmem:[%s2272_s6 + $0xc9] sm:$0xff] }
  0x7f   : > { %v536_v32 = vmul.f32 %v2475_v27, %v2418_v45  ;;  %v537_v33 = vmul.f32 %v2475_v27, %v2421_v50  ;;  %v538_v34 = vmul.f32 %v2475_v27, %v2424_v51  ;;  %v539_v30 = vmul.f32 %v2475_v27, %v2427_v52  ;;  %3419 = vst [vmem:[#allocation24_spill] sm:$0xff] %v2495_v31 }
  0x80   : > { %v540_v37 = vmul.f32 %v2475_v27, %v2434_v57  ;;  %v541_v38 = vmul.f32 %v2475_v27, %v2437_v58  ;;  %v542_v39 = vmul.f32 %v2475_v27, %v2440_v22  ;;  %v543_v40 = vmul.f32 %v2475_v27, %v2451_v0 }
  0x81   : > { %v544_v46 = vmul.f32 %v2475_v27, %v2454_v1  ;;  %v545_v47 = vmul.f32 %v2475_v27, %v2457_v2  ;;  %v546_v48 = vmul.f32 %v2475_v27, %v2492_v35  ;;  %v547_v49 = vmul.f32 %v2475_v27, %v2495_v31 }
  0x82   : > { %v548_v53 = vadd.f32 %v532_v23, %v511_v20  ;;  %v549_v54 = vadd.f32 %v533_v24, %v512_v7  ;;  %v550_v55 = vadd.f32 %v534_v25, %v513_v21  ;;  %v551_v56 = vadd.f32 %v535_v29, %v514_v9  ;;  %v2557_v25 = vld [vmem:[#allocation5 + $0x2] ss:$0 sm:$0xff] }
  0x83   : > { %v552_v59 = vadd.f32 %v536_v32, %v515_v26  ;;  %v553_v61 = vadd.f32 %v537_v33, %v516_v10  ;;  %v554_v62 = vadd.f32 %v538_v34, %v517_v11  ;;  %v555_v63 = vadd.f32 %v539_v30, %v518_v16  ;;  %v345_v11 = vld [vmem:[%s2272_s6 + $0x1a] sm:$0xff]  ;;  %v346_v16 = vld [vmem:[%s2272_s6 + $0x22] sm:$0xff]  ;;  %3423 = vst [vmem:[#allocation28_spill] sm:$0xff] %v2557_v25  ;;  %v2560_v30 = vld [vmem:[%s2272_s6 + $0x32] sm:$0xff] }
  0x84   : > { %v556_v12 = vadd.f32 %v540_v37, %v519_v28  ;;  %v557_v13 = vadd.f32 %v541_v38, %v520_v17  ;;  %v558_v14 = vadd.f32 %v542_v39, %v521_v60  ;;  %v559_v15 = vadd.f32 %v543_v40, %v522_v6  ;;  %v2532_v6 = vld [vmem:[%s2272_s6 + $0xd9] sm:$0xff]  ;;  %v2566_v38 = vld [vmem:[%s2272_s6 + $0x4a] sm:$0xff] }
  0x85   : > { %v560_v18 = vadd.f32 %v544_v46, %v523_v5  ;;  %v561_v19 = vadd.f32 %v545_v47, %v524_v43  ;;  %v562_v4 = vadd.f32 %v546_v48, %v525_v8  ;;  %v563_v27 = vadd.f32 %v547_v49, %v526_v36  ;;  %3421 = vst [vmem:[#allocation26_spill] sm:$0xff] %v2532_v6  ;;  %v2535_v36 = vld [vmem:[%s2272_s6 + $0xe1] sm:$0xff]  ;;  %v2569_v48 = vld [vmem:[%s2272_s6 + $0x52] sm:$0xff] }
  0x86   : > { %v569_v20 = vmul.f32 %v2513_v3, %v2412_v41  ;;  %v570_v7 = vmul.f32 %v2513_v3, %v2415_v44  ;;  %v571_v21 = vmul.f32 %v2513_v3, %v2418_v45  ;;  %v572_v9 = vmul.f32 %v2513_v3, %v2421_v50  ;;  %3422 = vst [vmem:[#allocation27_spill] sm:$0xff] %v2535_v36  ;;  %v2563_v37 = vld [vmem:[%s2272_s6 + $0x3a] sm:$0xff]  ;;  %v2572_v49 = vld [vmem:[%s2272_s6 + $0x62] sm:$0xff] }
  0x87   : > { %v573_v60 = vmul.f32 %v2513_v3, %v2424_v51  ;;  %v574_v8 = vmul.f32 %v2513_v3, %v2427_v52  ;;  %v575_v43 = vmul.f32 %v2513_v3, %v2434_v57  ;;  %v576_v5 = vmul.f32 %v2513_v3, %v2437_v58 }
  0x88   : > { %v577_v41 = vmul.f32 %v2513_v3, %v2440_v22  ;;  %v578_v44 = vmul.f32 %v2513_v3, %v2451_v0  ;;  %v579_v45 = vmul.f32 %v2513_v3, %v2454_v1  ;;  %v580_v50 = vmul.f32 %v2513_v3, %v2457_v2  ;;  %v343_v22 = vld [vmem:[%s2272_s6 + $0x2] sm:$0xff]  ;;  %v344_v0 = vld [vmem:[%s2272_s6 + $0xa] sm:$0xff] }
  0x89   : > { %v581_v51 = vmul.f32 %v2513_v3, %v2492_v35  ;;  %v582_v52 = vmul.f32 %v2513_v3, %v2495_v31  ;;  %v583_v57 = vmul.f32 %v2513_v3, %v2532_v6  ;;  %v584_v58 = vmul.f32 %v2513_v3, %v2535_v36 }
  0x8a   : > { %v585_v26 = vadd.f32 %v569_v20, %v548_v53  ;;  %v586_v1 = vadd.f32 %v570_v7, %v549_v54  ;;  %v587_v2 = vadd.f32 %v571_v21, %v550_v55  ;;  %v588_v10 = vadd.f32 %v572_v9, %v551_v56  ;;  %v2575_v53 = vld [vmem:[%s2272_s6 + $0x6a] sm:$0xff] }
  0x8b   : > { %v589_v28 = vadd.f32 %v573_v60, %v552_v59  ;;  %v590_v17 = vadd.f32 %v574_v8, %v553_v61  ;;  %v591_v23 = vadd.f32 %v575_v43, %v554_v62  ;;  %v592_v24 = vadd.f32 %v576_v5, %v555_v63  ;;  %v2582_v61 = vld [vmem:[%s2272_s6 + $0x7a] sm:$0xff]  ;;  %v2585_v62 = vld [vmem:[%s2272_s6 + $0x82] sm:$0xff] }
  0x8c   : > { %v593_v29 = vadd.f32 %v577_v41, %v556_v12  ;;  %v594_v32 = vadd.f32 %v578_v44, %v557_v13  ;;  %v595_v33 = vadd.f32 %v579_v45, %v558_v14  ;;  %v596_v34 = vadd.f32 %v580_v50, %v559_v15  ;;  %v2599_v15 = vld [vmem:[%s2272_s6 + $0x9a] sm:$0xff] }
  0x8d   : > { %v597_v39 = vadd.f32 %v581_v51, %v560_v18  ;;  %v598_v40 = vadd.f32 %v582_v52, %v561_v19  ;;  %v599_v46 = vadd.f32 %v583_v57, %v562_v4  ;;  %v600_v47 = vadd.f32 %v584_v58, %v563_v27  ;;  %v2588_v27 = vld [vmem:[%s2272_s6 + $0x92] sm:$0xff]  ;;  %v2602_v18 = vld [vmem:[%s2272_s6 + $0xaa] sm:$0xff] }
  0x8e   : > { %v606_v54 = vmul.f32 %v2557_v25, %v343_v22  ;;  %v607_v55 = vmul.f32 %v2557_v25, %v344_v0  ;;  %v608_v56 = vmul.f32 %v2557_v25, %v345_v11  ;;  %v609_v59 = vmul.f32 %v2557_v25, %v346_v16  ;;  %v2605_v19 = vld [vmem:[%s2272_s6 + $0xb2] sm:$0xff] }
  0x8f   : > { %v610_v63 = vmul.f32 %v2557_v25, %v2560_v30  ;;  %v611_v12 = vmul.f32 %v2557_v25, %v2563_v37  ;;  %v612_v13 = vmul.f32 %v2557_v25, %v2566_v38  ;;  %v613_v14 = vmul.f32 %v2557_v25, %v2569_v48  ;;  %v2623_v58 = vld [vmem:[#allocation5 + $0x5] ss:$0 sm:$0xff] }
  0x90   : > { %v614_v4 = vmul.f32 %v2557_v25, %v2572_v49  ;;  %v615_v20 = vmul.f32 %v2557_v25, %v2575_v53  ;;  %v616_v7 = vmul.f32 %v2557_v25, %v2582_v61  ;;  %v617_v21 = vmul.f32 %v2557_v25, %v2585_v62  ;;  %3424 = vst [vmem:[#allocation29_spill] sm:$0xff] %v2623_v58 }
  0x91   : > { %v618_v9 = vmul.f32 %v2557_v25, %v2588_v27  ;;  %v619_v60 = vmul.f32 %v2557_v25, %v2599_v15  ;;  %v620_v8 = vmul.f32 %v2557_v25, %v2602_v18  ;;  %v621_v43 = vmul.f32 %v2557_v25, %v2605_v19 }
  0x92   : > { %v622_v5 = vadd.f32 %v606_v54, %v585_v26  ;;  %v623_v41 = vadd.f32 %v607_v55, %v586_v1  ;;  %v624_v44 = vadd.f32 %v608_v56, %v587_v2  ;;  %v625_v45 = vadd.f32 %v609_v59, %v588_v10 }
  0x93   : > { %v626_v50 = vadd.f32 %v610_v63, %v589_v28  ;;  %v627_v51 = vadd.f32 %v611_v12, %v590_v17  ;;  %v628_v52 = vadd.f32 %v612_v13, %v591_v23  ;;  %v629_v57 = vadd.f32 %v613_v14, %v592_v24  ;;  %v2640_v24 = vld [vmem:[%s2272_s6 + $0xc2] sm:$0xff] }
  0x94   : > { %v630_v22 = vadd.f32 %v614_v4, %v593_v29  ;;  %v631_v0 = vadd.f32 %v615_v20, %v594_v32  ;;  %v632_v3 = vadd.f32 %v616_v7, %v595_v33  ;;  %v633_v36 = vadd.f32 %v617_v21, %v596_v34  ;;  %3425 = vst [vmem:[#allocation30_spill] sm:$0xff] %v2640_v24  ;;  %v2661_v4 = vld [vmem:[#allocation5 + $0x8] ss:$0 sm:$0xff] }
  0x95   : > { %v634_v6 = vadd.f32 %v618_v9, %v597_v39  ;;  %v635_v31 = vadd.f32 %v619_v60, %v598_v40  ;;  %v636_v35 = vadd.f32 %v620_v8, %v599_v46  ;;  %v637_v25 = vadd.f32 %v621_v43, %v600_v47  ;;  %3427 = vst [vmem:[#allocation32_spill] sm:$0xff] %v2661_v4 }
  0x96   : > { %v643_v26 = vmul.f32 %v2623_v58, %v345_v11  ;;  %v644_v1 = vmul.f32 %v2623_v58, %v346_v16  ;;  %v645_v2 = vmul.f32 %v2623_v58, %v2560_v30  ;;  %v646_v10 = vmul.f32 %v2623_v58, %v2563_v37  ;;  %v2643_v16 = vld [vmem:[%s2272_s6 + $0xca] sm:$0xff] }
  0x97   : > { %v647_v28 = vmul.f32 %v2623_v58, %v2566_v38  ;;  %v648_v17 = vmul.f32 %v2623_v58, %v2569_v48  ;;  %v649_v23 = vmul.f32 %v2623_v58, %v2572_v49  ;;  %v650_v11 = vmul.f32 %v2623_v58, %v2575_v53  ;;  %3426 = vst [vmem:[#allocation31_spill] sm:$0xff] %v2643_v16 }
  0x98   : > { %v651_v29 = vmul.f32 %v2623_v58, %v2582_v61  ;;  %v652_v32 = vmul.f32 %v2623_v58, %v2585_v62  ;;  %v653_v33 = vmul.f32 %v2623_v58, %v2588_v27  ;;  %v654_v34 = vmul.f32 %v2623_v58, %v2599_v15 }
  0x99   : > { %v655_v39 = vmul.f32 %v2623_v58, %v2602_v18  ;;  %v656_v40 = vmul.f32 %v2623_v58, %v2605_v19  ;;  %v657_v46 = vmul.f32 %v2623_v58, %v2640_v24  ;;  %v658_v47 = vmul.f32 %v2623_v58, %v2643_v16 }
  0x9a   : > { %v659_v54 = vadd.f32 %v643_v26, %v622_v5  ;;  %v660_v55 = vadd.f32 %v644_v1, %v623_v41  ;;  %v661_v56 = vadd.f32 %v645_v2, %v624_v44  ;;  %v662_v59 = vadd.f32 %v646_v10, %v625_v45 }
  0x9b   : > { %v663_v63 = vadd.f32 %v647_v28, %v626_v50  ;;  %v664_v12 = vadd.f32 %v648_v17, %v627_v51  ;;  %v665_v13 = vadd.f32 %v649_v23, %v628_v52  ;;  %v666_v14 = vadd.f32 %v650_v11, %v629_v57 }
  0x9c   : > { %v667_v20 = vadd.f32 %v651_v29, %v630_v22  ;;  %v668_v7 = vadd.f32 %v652_v32, %v631_v0  ;;  %v669_v21 = vadd.f32 %v653_v33, %v632_v3  ;;  %v670_v9 = vadd.f32 %v654_v34, %v633_v36  ;;  %v2680_v36 = vld [vmem:[%s2272_s6 + $0xda] sm:$0xff] }
  0x9d   : > { %v671_v60 = vadd.f32 %v655_v39, %v634_v6  ;;  %v672_v8 = vadd.f32 %v656_v40, %v635_v31  ;;  %v673_v43 = vadd.f32 %v657_v46, %v636_v35  ;;  %v674_v58 = vadd.f32 %v658_v47, %v637_v25  ;;  %3428 = vst [vmem:[#allocation33_spill] sm:$0xff] %v2680_v36  ;;  %v2683_v25 = vld [vmem:[%s2272_s6 + $0xe2] sm:$0xff] }
  0x9e   : > { %v680_v5 = vmul.f32 %v2661_v4, %v2560_v30  ;;  %v681_v41 = vmul.f32 %v2661_v4, %v2563_v37  ;;  %v682_v44 = vmul.f32 %v2661_v4, %v2566_v38  ;;  %v683_v45 = vmul.f32 %v2661_v4, %v2569_v48  ;;  %3429 = vst [vmem:[#allocation34_spill] sm:$0xff] %v2683_v25 }
  0x9f   : > { %v684_v3 = vmul.f32 %v2661_v4, %v2572_v49  ;;  %v685_v31 = vmul.f32 %v2661_v4, %v2575_v53  ;;  %v686_v35 = vmul.f32 %v2661_v4, %v2582_v61  ;;  %v687_v6 = vmul.f32 %v2661_v4, %v2585_v62 }
  0xa0   : > { %v688_v30 = vmul.f32 %v2661_v4, %v2588_v27  ;;  %v689_v37 = vmul.f32 %v2661_v4, %v2599_v15  ;;  %v690_v38 = vmul.f32 %v2661_v4, %v2602_v18  ;;  %v691_v48 = vmul.f32 %v2661_v4, %v2605_v19 }
  0xa1   : > { %v692_v49 = vmul.f32 %v2661_v4, %v2640_v24  ;;  %v693_v53 = vmul.f32 %v2661_v4, %v2643_v16  ;;  %v694_v61 = vmul.f32 %v2661_v4, %v2680_v36  ;;  %v695_v62 = vmul.f32 %v2661_v4, %v2683_v25 }
  0xa2   : > { %v696_v27 = vadd.f32 %v680_v5, %v659_v54  ;;  %v697_v15 = vadd.f32 %v681_v41, %v660_v55  ;;  %v698_v50 = vadd.f32 %v682_v44, %v661_v56  ;;  %v699_v51 = vadd.f32 %v683_v45, %v662_v59  ;;  %v3446_v41 = vld [vmem:[#allocation15_spill] sm:$0xff]  ;;  %v2755_v45 = vld [vmem:[%s2272_s6 + $0x108] sm:$0xff] }
  0xa3   : > { %v700_v18 = vadd.f32 %v684_v3, %v663_v63  ;;  %v701_v52 = vadd.f32 %v685_v31, %v664_v12  ;;  %v702_v19 = vadd.f32 %v686_v35, %v665_v13  ;;  %v703_v57 = vadd.f32 %v687_v6, %v666_v14  ;;  %v2758_v3 = vld [vmem:[%s2272_s6 + $0x110] sm:$0xff]  ;;  %v2761_v31 = vld [vmem:[%s2272_s6 + $0x120] sm:$0xff] }
  0xa4   : > { %v704_v22 = vadd.f32 %v688_v30, %v667_v20  ;;  %v705_v0 = vadd.f32 %v689_v37, %v668_v7  ;;  %v706_v26 = vadd.f32 %v690_v38, %v669_v21  ;;  %v707_v1 = vadd.f32 %v691_v48, %v670_v9  ;;  %v2741_v9 = vld [vmem:[%s2272_s6 + $0xf0] sm:$0xff]  ;;  %v3449_v48 = vld [vmem:[#allocation20_spill] sm:$0xff] }
  0xa5   : > { %v708_v2 = vadd.f32 %v692_v49, %v671_v60  ;;  %v709_v10 = vadd.f32 %v693_v53, %v672_v8  ;;  %v710_v28 = vadd.f32 %v694_v61, %v673_v43  ;;  %v711_v17 = vadd.f32 %v695_v62, %v674_v58  ;;  %v2744_v60 = vld [vmem:[%s2272_s6 + $0xf8] sm:$0xff]  ;;  %v3447_v6 = vld [vmem:[#allocation17_spill] sm:$0xff]  ;;  %v3448_v37 = vld [vmem:[#allocation19_spill] sm:$0xff] }
  0xa6   : > { %v712_v23 = vpack.c.bf16 %v697_v15, %v696_v27  ;;  %v713_v11 = vpack.c.bf16 %v699_v51, %v698_v50  ;;  %v714_v29 = vpack.c.bf16 %v701_v52, %v700_v18  ;;  %v715_v32 = vpack.c.bf16 %v703_v57, %v702_v19  ;;  %v2771_v49 = vld [vmem:[%s2272_s6 + $0x128] sm:$0xff]  ;;  %v2774_v53 = vld [vmem:[%s2272_s6 + $0x138] sm:$0xff]  ;;  %v2777_v61 = vld [vmem:[%s2272_s6 + $0x140] sm:$0xff] }
  0xa7   : > { %v716_v33 = vpack.c.bf16 %v705_v0, %v704_v22  ;;  %v717_v34 = vpack.c.bf16 %v707_v1, %v706_v26  ;;  %v718_v39 = vpack.c.bf16 %v709_v10, %v708_v2  ;;  %v719_v40 = vpack.c.bf16 %v711_v17, %v710_v28  ;;  %v2788_v51 = vld [vmem:[%s2272_s6 + $0x150] sm:$0xff]  ;;  %v2791_v18 = vld [vmem:[%s2272_s6 + $0x158] sm:$0xff]  ;;  %v2794_v52 = vld [vmem:[%s2272_s6 + $0x168] sm:$0xff] }
  0xa8   : > { %v2702_v46 = vunpack.c.l.bf16 %v712_v23  ;;  %v2704_v47 = vunpack.c.h.bf16 %v712_v23  ;;  %1697 = vst [vmem:[%s2706_s23] sm:$0xff] %v712_v23   ;;  %1773 = vst [vmem:[%s2706_s23 + $0x8] sm:$0xff] %v713_v11   ;;  %v2716_v58 = vunpack.c.l.bf16 %v713_v11  ;;  %v2718_v54 = vunpack.c.h.bf16 %v713_v11  ;;  %v302_v26 = vld [vmem:[%s2272_s6 + $0x170] sm:$0xff]  ;;  %v3452_v11 = vld [vmem:[#allocation16_spill] sm:$0xff] }
  0xa9   : > { %1774 = vst [vmem:[%s2706_s23 + $0x10] sm:$0xff] %v714_v29   ;;  %1775 = vst [vmem:[%s2706_s23 + $0x18] sm:$0xff] %v715_v32   ;;  %v2720_v55 = vunpack.c.l.bf16 %v714_v29  ;;  %v2722_v56 = vunpack.c.h.bf16 %v714_v29  ;;  %v2724_v59 = vunpack.c.l.bf16 %v715_v32  ;;  %v2726_v63 = vunpack.c.h.bf16 %v715_v32 }
  0xaa   : > { %3430 = vst [vmem:[#allocation35_spill] sm:$0xff] %v2702_v46  ;;  %3431 = vst [vmem:[#allocation36_spill] sm:$0xff] %v2704_v47  ;;  %v2728_v12 = vunpack.c.l.bf16 %v716_v33  ;;  %v2730_v13 = vunpack.c.h.bf16 %v716_v33  ;;  %v2732_v14 = vunpack.c.l.bf16 %v717_v34  ;;  %v2734_v20 = vunpack.c.h.bf16 %v717_v34 }
  0xab   : > { %1776 = vst [vmem:[%s2706_s23 + $0x20] sm:$0xff] %v716_v33   ;;  %1777 = vst [vmem:[%s2706_s23 + $0x28] sm:$0xff] %v717_v34   ;;  %v2736_v7 = vunpack.c.l.bf16 %v718_v39  ;;  %v808_v21 = vadd.f32 %v2704_v47, %v2702_v46  ;;  %v2746_v8 = vunpack.c.h.bf16 %v718_v39  ;;  %v2748_v43 = vunpack.c.l.bf16 %v719_v40 }
  0xac   : > { %1778 = vst [vmem:[%s2706_s23 + $0x30] sm:$0xff] %v718_v39   ;;  %1779 = vst [vmem:[%s2706_s23 + $0x38] sm:$0xff] %v719_v40   ;;  %v2750_v5 = vunpack.c.h.bf16 %v719_v40  ;;  %v873_v44 = vmul.f32 %v3446_v41, %v2354_v42  ;;  %v874_v30 = vmul.f32 %v3446_v41, %v3447_v6  ;;  %v875_v38 = vmul.f32 %v3446_v41, %v3448_v37 }
  0xad   : > { %3432 = vst [vmem:[#allocation37_spill] sm:$0xff] %v2716_v58  ;;  %3433 = vst [vmem:[#allocation38_spill] sm:$0xff] %v2718_v54  ;;  %v809_v35 = vadd.f32 %v808_v21, %v2716_v58  ;;  %v876_v42 = vmul.f32 %v3446_v41, %v3449_v48  ;;  %v877_v62 = vmul.f32 %v3446_v41, %v2741_v9 }
  0xae   : > { %3434 = vst [vmem:[#allocation39_spill] sm:$0xff] %v2720_v55  ;;  %3435 = vst [vmem:[#allocation40_spill] sm:$0xff] %v2722_v56  ;;  %v878_v27 = vmul.f32 %v3446_v41, %v2744_v60  ;;  %v879_v15 = vmul.f32 %v3446_v41, %v2755_v45  ;;  %v880_v50 = vmul.f32 %v3446_v41, %v2758_v3 }
  0xaf   : > { %3436 = vst [vmem:[#allocation41_spill] sm:$0xff] %v2724_v59  ;;  %3437 = vst [vmem:[#allocation42_spill] sm:$0xff] %v2726_v63  ;;  %v810_v19 = vadd.f32 %v809_v35, %v2718_v54  ;;  %v881_v57 = vmul.f32 %v3446_v41, %v2761_v31  ;;  %v882_v22 = vmul.f32 %v3446_v41, %v2771_v49 }
  0xb0   : > { %3438 = vst [vmem:[#allocation43_spill] sm:$0xff] %v2728_v12  ;;  %3439 = vst [vmem:[#allocation44_spill] sm:$0xff] %v2730_v13  ;;  %v883_v0 = vmul.f32 %v3446_v41, %v2774_v53  ;;  %v884_v1 = vmul.f32 %v3446_v41, %v2777_v61  ;;  %v885_v2 = vmul.f32 %v3446_v41, %v2788_v51 }
  0xb1   : > { %3440 = vst [vmem:[#allocation45_spill] sm:$0xff] %v2732_v14  ;;  %3441 = vst [vmem:[#allocation46_spill] sm:$0xff] %v2734_v20  ;;  %v886_v10 = vmul.f32 %v3446_v41, %v2791_v18  ;;  %v887_v28 = vmul.f32 %v3446_v41, %v2794_v52  ;;  %v811_v17 = vadd.f32 %v810_v19, %v2720_v55 }
  0xb2   : > { %3442 = vst [vmem:[#allocation47_spill] sm:$0xff] %v2736_v7  ;;  %3443 = vst [vmem:[#allocation48_spill] sm:$0xff] %v2746_v8  ;;  %v888_v23 = vmul.f32 %v3446_v41, %v302_v26  ;;  %v910_v29 = vmul.f32 %v3452_v11, %v3448_v37  ;;  %v911_v32 = vmul.f32 %v3452_v11, %v3449_v48  ;;  %v303_v37 = vld [vmem:[%s2272_s6 + $0x180] sm:$0xff]  ;;  %v304_v48 = vld [vmem:[%s2272_s6 + $0x188] sm:$0xff] }
  0xb3   : > { %3444 = vst [vmem:[#allocation49_spill] sm:$0xff] %v2748_v43  ;;  %3445 = vst [vmem:[#allocation50_spill] sm:$0xff] %v2750_v5  ;;  %v912_v33 = vmul.f32 %v3452_v11, %v2741_v9  ;;  %v913_v34 = vmul.f32 %v3452_v11, %v2744_v60  ;;  %v914_v39 = vmul.f32 %v3452_v11, %v2755_v45 }
  0xb4   : > { %3450 = vst [vmem:[#allocation15_spill] sm:$0xff] %v2791_v18  ;;  %3451 = vst [vmem:[#allocation17_spill] sm:$0xff] %v2794_v52  ;;  %v915_v40 = vmul.f32 %v3452_v11, %v2758_v3  ;;  %v812_v21 = vadd.f32 %v811_v17, %v2722_v56  ;;  %v916_v41 = vmul.f32 %v3452_v11, %v2761_v31 }
  0xb5   : > { %v917_v35 = vmul.f32 %v3452_v11, %v2771_v49  ;;  %v918_v6 = vmul.f32 %v3452_v11, %v2774_v53  ;;  %v919_v19 = vmul.f32 %v3452_v11, %v2777_v61  ;;  %v920_v55 = vmul.f32 %v3452_v11, %v2788_v51 }
  0xb6   : > { %v921_v17 = vmul.f32 %v3452_v11, %v2791_v18  ;;  %v922_v56 = vmul.f32 %v3452_v11, %v2794_v52  ;;  %v813_v54 = vadd.f32 %v812_v21, %v2724_v59  ;;  %v923_v58 = vmul.f32 %v3452_v11, %v302_v26 }
  0xb7   : > { %v924_v47 = vmul.f32 %v3452_v11, %v303_v37  ;;  %v925_v46 = vmul.f32 %v3452_v11, %v304_v48  ;;  %v926_v4 = vadd.f32 %v910_v29, %v873_v44  ;;  %v927_v25 = vadd.f32 %v911_v32, %v874_v30 }
  0xb8   : > { %v928_v36 = vadd.f32 %v912_v33, %v875_v38  ;;  %v929_v16 = vadd.f32 %v913_v34, %v876_v42  ;;  %v814_v24 = vadd.f32 %v813_v54, %v2726_v63  ;;  %v930_v5 = vadd.f32 %v914_v39, %v877_v62  ;;  %v3453_v38 = vld [vmem:[#allocation18_spill] sm:$0xff] }
  0xb9   : > { %v931_v43 = vadd.f32 %v915_v40, %v878_v27  ;;  %v932_v8 = vadd.f32 %v916_v41, %v879_v15  ;;  %v933_v7 = vadd.f32 %v917_v35, %v880_v50  ;;  %v934_v20 = vadd.f32 %v918_v6, %v881_v57  ;;  %v305_v62 = vld [vmem:[%s2272_s6 + $0x198] sm:$0xff]  ;;  %v306_v27 = vld [vmem:[%s2272_s6 + $0x1a0] sm:$0xff] }
  0xba   : > { %v935_v21 = vadd.f32 %v919_v19, %v882_v22  ;;  %v936_v59 = vadd.f32 %v920_v55, %v883_v0  ;;  %v815_v52 = vadd.f32 %v814_v24, %v2728_v12  ;;  %v937_v18 = vadd.f32 %v921_v17, %v884_v1  ;;  %v3457_v0 = vld [vmem:[#allocation46_spill] sm:$0xff]  ;;  %v3458_v32 = vld [vmem:[#allocation47_spill] sm:$0xff] }
  0xbb   : > { %v938_v14 = vadd.f32 %v922_v56, %v885_v2  ;;  %v939_v11 = vadd.f32 %v923_v58, %v886_v10  ;;  %v940_v44 = vadd.f32 %v924_v47, %v887_v28  ;;  %v941_v30 = vadd.f32 %v925_v46, %v888_v23  ;;  %v3455_v50 = vld [vmem:[#allocation15_spill] sm:$0xff]  ;;  %v3463_v17 = vld [vmem:[#allocation26_spill] sm:$0xff] }
  0xbc   : > { %v947_v42 = vmul.f32 %v3453_v38, %v2741_v9  ;;  %v948_v54 = vmul.f32 %v3453_v38, %v2744_v60  ;;  %v816_v15 = vadd.f32 %v815_v52, %v2730_v13  ;;  %v949_v55 = vmul.f32 %v3453_v38, %v2755_v45  ;;  %v3454_v60 = vld [vmem:[#allocation45_spill] sm:$0xff] }
  0xbd   : > { %v950_v24 = vmul.f32 %v3453_v38, %v2758_v3  ;;  %v951_v47 = vmul.f32 %v3453_v38, %v2761_v31  ;;  %v952_v46 = vmul.f32 %v3453_v38, %v2771_v49  ;;  %v953_v58 = vmul.f32 %v3453_v38, %v2774_v53  ;;  %v3456_v52 = vld [vmem:[#allocation17_spill] sm:$0xff] }
  0xbe   : > { %v954_v56 = vmul.f32 %v3453_v38, %v2777_v61  ;;  %v955_v9 = vmul.f32 %v3453_v38, %v2788_v51  ;;  %v817_v45 = vadd.f32 %v816_v15, %v3454_v60  ;;  %v956_v3 = vmul.f32 %v3453_v38, %v3455_v50 }
  0xbf   : > { %v957_v31 = vmul.f32 %v3453_v38, %v3456_v52  ;;  %v958_v57 = vmul.f32 %v3453_v38, %v302_v26  ;;  %v959_v49 = vmul.f32 %v3453_v38, %v303_v37  ;;  %v960_v53 = vmul.f32 %v3453_v38, %v304_v48  ;;  %v3460_v37 = vld [vmem:[#allocation23_spill] sm:$0xff]  ;;  %v3461_v48 = vld [vmem:[#allocation21_spill] sm:$0xff]  ;;  %v3466_v52 = vld [vmem:[#allocation50_spill] sm:$0xff] }
  0xc0   : > { %v961_v22 = vmul.f32 %v3453_v38, %v305_v62  ;;  %v962_v61 = vmul.f32 %v3453_v38, %v306_v27  ;;  %v818_v51 = vadd.f32 %v817_v45, %v3457_v0  ;;  %v963_v1 = vadd.f32 %v947_v42, %v926_v4  ;;  %v2909_v38 = vld [vmem:[%s2272_s6 + $0x129] sm:$0xff]  ;;  %v2912_v42 = vld [vmem:[%s2272_s6 + $0x139] sm:$0xff] }
  0xc1   : > { %v964_v2 = vadd.f32 %v948_v54, %v927_v25  ;;  %v965_v10 = vadd.f32 %v949_v55, %v928_v36  ;;  %v966_v28 = vadd.f32 %v950_v24, %v929_v16  ;;  %v967_v23 = vadd.f32 %v951_v47, %v930_v5  ;;  %v2883_v36 = vld [vmem:[%s2272_s6 + $0xf1] sm:$0xff]  ;;  %v2886_v16 = vld [vmem:[%s2272_s6 + $0xf9] sm:$0xff]  ;;  %v2915_v54 = vld [vmem:[%s2272_s6 + $0x141] sm:$0xff] }
  0xc2   : > { %v968_v29 = vadd.f32 %v952_v46, %v931_v43  ;;  %v969_v26 = vadd.f32 %v953_v58, %v932_v8  ;;  %v819_v33 = vadd.f32 %v818_v51, %v3458_v32  ;;  %v970_v34 = vadd.f32 %v954_v56, %v933_v7  ;;  %v3459_v25 = vld [vmem:[#allocation48_spill] sm:$0xff]  ;;  %v3465_v62 = vld [vmem:[#allocation49_spill] sm:$0xff] }
  0xc3   : > { %v971_v39 = vadd.f32 %v955_v9, %v934_v20  ;;  %v972_v40 = vadd.f32 %v956_v3, %v935_v21  ;;  %v973_v41 = vadd.f32 %v957_v31, %v936_v59  ;;  %v974_v35 = vadd.f32 %v958_v57, %v937_v18  ;;  %v2892_v59 = vld [vmem:[%s2272_s6 + $0x109] sm:$0xff]  ;;  %v2898_v7 = vld [vmem:[%s2272_s6 + $0x121] sm:$0xff]  ;;  %v2925_v47 = vld [vmem:[%s2272_s6 + $0x151] sm:$0xff] }
  0xc4   : > { %v975_v6 = vadd.f32 %v959_v49, %v938_v14  ;;  %v976_v4 = vadd.f32 %v960_v53, %v939_v11  ;;  %v820_v8 = vadd.f32 %v819_v33, %v3459_v25  ;;  %v977_v43 = vadd.f32 %v961_v22, %v940_v44  ;;  %v2895_v14 = vld [vmem:[%s2272_s6 + $0x111] sm:$0xff]  ;;  %v2928_v46 = vld [vmem:[%s2272_s6 + $0x159] sm:$0xff]  ;;  %v2931_v58 = vld [vmem:[%s2272_s6 + $0x169] sm:$0xff] }
  0xc5   : > { %v978_v5 = vadd.f32 %v962_v61, %v941_v30  ;;  %v984_v20 = vmul.f32 %v3461_v48, %v3460_v37  ;;  %v3462_v18 = vld [vmem:[#allocation24_spill] sm:$0xff]  ;;  %v986_v21 = vmul.f32 %v3461_v48, %v3463_v17  ;;  %v3464_v11 = vld [vmem:[#allocation27_spill] sm:$0xff]  ;;  %v988_v30 = vmul.f32 %v3461_v48, %v2883_v36 }
  0xc6   : > { %v985_v19 = vmul.f32 %v3461_v48, %v3462_v18  ;;  %v987_v44 = vmul.f32 %v3461_v48, %v3464_v11  ;;  %v821_v27 = vadd.f32 %v820_v8, %v3465_v62  ;;  %v989_v15 = vmul.f32 %v3461_v48, %v2886_v16  ;;  %v2942_v3 = vld [vmem:[%s2272_s6 + $0x171] sm:$0xff] }
  0xc7   : > { %v990_v55 = vmul.f32 %v3461_v48, %v2892_v59  ;;  %v991_v24 = vmul.f32 %v3461_v48, %v2895_v14  ;;  %v992_v56 = vmul.f32 %v3461_v48, %v2898_v7  ;;  %v993_v9 = vmul.f32 %v3461_v48, %v2909_v38 }
  0xc8   : > { %v994_v45 = vmul.f32 %v3461_v48, %v2912_v42  ;;  %v995_v50 = vmul.f32 %v3461_v48, %v2915_v54  ;;  %v2945_v31 = vadd.f32 %v821_v27, %v3466_v52  ;;  %v996_v57 = vmul.f32 %v3461_v48, %v2925_v47 }
  0xc9   : > { %v997_v49 = vmul.f32 %v3461_v48, %v2928_v46  ;;  %v998_v53 = vmul.f32 %v3461_v48, %v2931_v58  ;;  %v999_v22 = vmul.f32 %v3461_v48, %v2942_v3  ;;  %v1000_v61 = vadd.f32 %v984_v20, %v963_v1  ;;  %v3468_v48 = vld [vmem:[#allocation22_spill] sm:$0xff] }
  0xca   : > { %3467 = vst [vmem:[#allocation19_spill] sm:$0xff] %v2945_v31  ;;  %v1001_v51 = vadd.f32 %v985_v19, %v964_v2  ;;  %v1002_v33 = vadd.f32 %v986_v21, %v965_v10  ;;  %v1003_v8 = vadd.f32 %v987_v44, %v966_v28  ;;  %v1004_v37 = vadd.f32 %v988_v30, %v967_v23 }
  0xcb   : > { %v1005_v18 = vadd.f32 %v989_v15, %v968_v29  ;;  %v1006_v27 = vadd.f32 %v990_v55, %v969_v26  ;;  %v1007_v52 = vadd.f32 %v991_v24, %v970_v34  ;;  %v1008_v62 = vadd.f32 %v992_v56, %v971_v39  ;;  %v339_v34 = vld [vmem:[%s2272_s6 + $0x181] sm:$0xff] }
  0xcc   : > { %v1009_v25 = vadd.f32 %v993_v9, %v972_v40  ;;  %v1010_v32 = vadd.f32 %v994_v45, %v973_v41  ;;  %v1011_v0 = vadd.f32 %v995_v50, %v974_v35  ;;  %v1012_v60 = vadd.f32 %v996_v57, %v975_v6  ;;  %v340_v6 = vld [vmem:[%s2272_s6 + $0x189] sm:$0xff] }
  0xcd   : > { %v1013_v13 = vadd.f32 %v997_v49, %v976_v4  ;;  %v1014_v31 = vadd.f32 %v998_v53, %v977_v43  ;;  %v1015_v12 = vadd.f32 %v999_v22, %v978_v5  ;;  %v1021_v1 = vmul.f32 %v3468_v48, %v3463_v17  ;;  %v341_v22 = vld [vmem:[%s2272_s6 + $0x199] sm:$0xff] }
  0xce   : > { %v1022_v2 = vmul.f32 %v3468_v48, %v3464_v11  ;;  %v1023_v10 = vmul.f32 %v3468_v48, %v2883_v36  ;;  %v1024_v28 = vmul.f32 %v3468_v48, %v2886_v16  ;;  %v1025_v23 = vmul.f32 %v3468_v48, %v2892_v59 }
  0xcf   : > { %v1026_v29 = vmul.f32 %v3468_v48, %v2895_v14  ;;  %v1027_v26 = vmul.f32 %v3468_v48, %v2898_v7  ;;  %v1028_v39 = vmul.f32 %v3468_v48, %v2909_v38  ;;  %v1029_v40 = vmul.f32 %v3468_v48, %v2912_v42 }
  0xd0   : > { %v1030_v41 = vmul.f32 %v3468_v48, %v2915_v54  ;;  %v1031_v35 = vmul.f32 %v3468_v48, %v2925_v47  ;;  %v1032_v4 = vmul.f32 %v3468_v48, %v2928_v46  ;;  %v1033_v43 = vmul.f32 %v3468_v48, %v2931_v58 }
  0xd1   : > { %v1034_v5 = vmul.f32 %v3468_v48, %v2942_v3  ;;  %v1035_v20 = vmul.f32 %v3468_v48, %v339_v34  ;;  %v1036_v19 = vmul.f32 %v3468_v48, %v340_v6  ;;  %v1037_v17 = vadd.f32 %v1021_v1, %v1000_v61  ;;  %v3469_v48 = vld [vmem:[#allocation25_spill] sm:$0xff] }
  0xd2   : > { %v1038_v21 = vadd.f32 %v1022_v2, %v1001_v51  ;;  %v1039_v11 = vadd.f32 %v1023_v10, %v1002_v33  ;;  %v1040_v44 = vadd.f32 %v1024_v28, %v1003_v8  ;;  %v1041_v30 = vadd.f32 %v1025_v23, %v1004_v37  ;;  %v342_v8 = vld [vmem:[%s2272_s6 + $0x1a1] sm:$0xff]  ;;  %v3018_v1 = vld [vmem:[%s2272_s6 + $0xf2] sm:$0xff] }
  0xd3   : > { %v1042_v15 = vadd.f32 %v1026_v29, %v1005_v18  ;;  %v1043_v55 = vadd.f32 %v1027_v26, %v1006_v27  ;;  %v1044_v24 = vadd.f32 %v1028_v39, %v1007_v52  ;;  %v1045_v56 = vadd.f32 %v1029_v40, %v1008_v62  ;;  %v3021_v2 = vld [vmem:[%s2272_s6 + $0xfa] sm:$0xff]  ;;  %v3024_v26 = vld [vmem:[%s2272_s6 + $0x10a] sm:$0xff]  ;;  %v3030_v39 = vld [vmem:[%s2272_s6 + $0x122] sm:$0xff] }
  0xd4   : > { %v1046_v9 = vadd.f32 %v1030_v41, %v1009_v25  ;;  %v1047_v45 = vadd.f32 %v1031_v35, %v1010_v32  ;;  %v1048_v50 = vadd.f32 %v1032_v4, %v1011_v0  ;;  %v1049_v57 = vadd.f32 %v1033_v43, %v1012_v60  ;;  %v3470_v41 = vld [vmem:[#allocation30_spill] sm:$0xff]  ;;  %v3471_v35 = vld [vmem:[#allocation28_spill] sm:$0xff]  ;;  %v3472_v4 = vld [vmem:[#allocation31_spill] sm:$0xff] }
  0xd5   : > { %v1050_v49 = vadd.f32 %v1034_v5, %v1013_v13  ;;  %v1051_v53 = vadd.f32 %v1035_v20, %v1014_v31  ;;  %v1052_v63 = vadd.f32 %v1036_v19, %v1015_v12  ;;  %v1058_v61 = vmul.f32 %v3469_v48, %v2883_v36  ;;  %v3473_v5 = vld [vmem:[#allocation33_spill] sm:$0xff] }
  0xd6   : > { %v1059_v51 = vmul.f32 %v3469_v48, %v2886_v16  ;;  %v1060_v33 = vmul.f32 %v3469_v48, %v2892_v59  ;;  %v1061_v25 = vmul.f32 %v3469_v48, %v2895_v14  ;;  %v1062_v60 = vmul.f32 %v3469_v48, %v2898_v7  ;;  %v3039_v19 = vld [vmem:[%s2272_s6 + $0x12a] sm:$0xff] }
  0xd7   : > { %v1063_v13 = vmul.f32 %v3469_v48, %v2909_v38  ;;  %v1064_v12 = vmul.f32 %v3469_v48, %v2912_v42  ;;  %v1065_v0 = vmul.f32 %v3469_v48, %v2915_v54  ;;  %v1066_v32 = vmul.f32 %v3469_v48, %v2925_v47 }
  0xd8   : > { %v1067_v36 = vmul.f32 %v3469_v48, %v2928_v46  ;;  %v1068_v16 = vmul.f32 %v3469_v48, %v2931_v58  ;;  %v1069_v59 = vmul.f32 %v3469_v48, %v2942_v3  ;;  %v1070_v14 = vmul.f32 %v3469_v48, %v339_v34  ;;  %v3027_v34 = vld [vmem:[%s2272_s6 + $0x112] sm:$0xff] }
  0xd9   : > { %v1071_v7 = vmul.f32 %v3469_v48, %v340_v6  ;;  %v1072_v38 = vmul.f32 %v3469_v48, %v341_v22  ;;  %v1073_v42 = vmul.f32 %v3469_v48, %v342_v8  ;;  %v1074_v54 = vadd.f32 %v1058_v61, %v1037_v17  ;;  %v3042_v17 = vld [vmem:[%s2272_s6 + $0x13a] sm:$0xff] }
  0xda   : > { %v1075_v62 = vadd.f32 %v1059_v51, %v1038_v21  ;;  %v1076_v47 = vadd.f32 %v1060_v33, %v1039_v11  ;;  %v1077_v46 = vadd.f32 %v1061_v25, %v1040_v44  ;;  %v1078_v58 = vadd.f32 %v1062_v60, %v1041_v30  ;;  %v3045_v21 = vld [vmem:[%s2272_s6 + $0x142] sm:$0xff] }
  0xdb   : > { %v1079_v52 = vadd.f32 %v1063_v13, %v1042_v15  ;;  %v1080_v3 = vadd.f32 %v1064_v12, %v1043_v55  ;;  %v1081_v31 = vadd.f32 %v1065_v0, %v1044_v24  ;;  %v1082_v37 = vadd.f32 %v1066_v32, %v1045_v56  ;;  %v3474_v11 = vld [vmem:[#allocation34_spill] sm:$0xff] }
  0xdc   : > { %v1083_v18 = vadd.f32 %v1067_v36, %v1046_v9  ;;  %v1084_v27 = vadd.f32 %v1068_v16, %v1047_v45  ;;  %v1085_v10 = vadd.f32 %v1069_v59, %v1048_v50  ;;  %v1086_v28 = vadd.f32 %v1070_v14, %v1049_v57  ;;  %v3056_v55 = vld [vmem:[%s2272_s6 + $0x152] sm:$0xff]  ;;  %v3059_v24 = vld [vmem:[%s2272_s6 + $0x15a] sm:$0xff]  ;;  %v3062_v56 = vld [vmem:[%s2272_s6 + $0x16a] sm:$0xff] }
  0xdd   : > { %v1087_v23 = vadd.f32 %v1071_v7, %v1050_v49  ;;  %v1088_v29 = vadd.f32 %v1072_v38, %v1051_v53  ;;  %v1089_v40 = vadd.f32 %v1073_v42, %v1052_v63  ;;  %v1095_v6 = vmul.f32 %v3471_v35, %v3470_v41  ;;  %v3073_v49 = vld [vmem:[%s2272_s6 + $0x172] sm:$0xff] }
  0xde   : > { %v1096_v43 = vmul.f32 %v3471_v35, %v3472_v4  ;;  %v1097_v20 = vmul.f32 %v3471_v35, %v3473_v5  ;;  %v1098_v44 = vmul.f32 %v3471_v35, %v3474_v11  ;;  %v1099_v63 = vmul.f32 %v3471_v35, %v3018_v1 }
  0xdf   : > { %v1100_v30 = vmul.f32 %v3471_v35, %v3021_v2  ;;  %v1101_v15 = vmul.f32 %v3471_v35, %v3024_v26  ;;  %v1102_v9 = vmul.f32 %v3471_v35, %v3027_v34  ;;  %v1103_v45 = vmul.f32 %v3471_v35, %v3030_v39 }
  0xe0   : > { %v1104_v50 = vmul.f32 %v3471_v35, %v3039_v19  ;;  %v1105_v57 = vmul.f32 %v3471_v35, %v3042_v17  ;;  %v1106_v53 = vmul.f32 %v3471_v35, %v3045_v21  ;;  %v1107_v22 = vmul.f32 %v3471_v35, %v3056_v55 }
  0xe1   : > { %v1108_v48 = vmul.f32 %v3471_v35, %v3059_v24  ;;  %v1109_v61 = vmul.f32 %v3471_v35, %v3062_v56  ;;  %v1110_v51 = vmul.f32 %v3471_v35, %v3073_v49  ;;  %v1111_v33 = vadd.f32 %v1095_v6, %v1074_v54  ;;  %v3475_v35 = vld [vmem:[#allocation29_spill] sm:$0xff] }
  0xe2   : > { %v1112_v8 = vadd.f32 %v1096_v43, %v1075_v62  ;;  %v1113_v25 = vadd.f32 %v1097_v20, %v1076_v47  ;;  %v1114_v60 = vadd.f32 %v1098_v44, %v1077_v46  ;;  %v1115_v13 = vadd.f32 %v1099_v63, %v1078_v58 }
  0xe3   : > { %v1116_v12 = vadd.f32 %v1100_v30, %v1079_v52  ;;  %v1117_v0 = vadd.f32 %v1101_v15, %v1080_v3  ;;  %v1118_v32 = vadd.f32 %v1102_v9, %v1081_v31  ;;  %v1119_v36 = vadd.f32 %v1103_v45, %v1082_v37  ;;  %v375_v31 = vld [vmem:[%s2272_s6 + $0x182] sm:$0xff] }
  0xe4   : > { %v1120_v16 = vadd.f32 %v1104_v50, %v1083_v18  ;;  %v1121_v59 = vadd.f32 %v1105_v57, %v1084_v27  ;;  %v1122_v14 = vadd.f32 %v1106_v53, %v1085_v10  ;;  %v1123_v7 = vadd.f32 %v1107_v22, %v1086_v28  ;;  %v376_v28 = vld [vmem:[%s2272_s6 + $0x18a] sm:$0xff] }
  0xe5   : > { %v1124_v38 = vadd.f32 %v1108_v48, %v1087_v23  ;;  %v1125_v42 = vadd.f32 %v1109_v61, %v1088_v29  ;;  %v1126_v41 = vadd.f32 %v1110_v51, %v1089_v40  ;;  %v1132_v54 = vmul.f32 %v3475_v35, %v3473_v5  ;;  %v377_v61 = vld [vmem:[%s2272_s6 + $0x19a] sm:$0xff] }
  0xe6   : > { %v1133_v62 = vmul.f32 %v3475_v35, %v3474_v11  ;;  %v1134_v47 = vmul.f32 %v3475_v35, %v3018_v1  ;;  %v1135_v46 = vmul.f32 %v3475_v35, %v3021_v2  ;;  %v1136_v58 = vmul.f32 %v3475_v35, %v3024_v26 }
  0xe7   : > { %v1137_v52 = vmul.f32 %v3475_v35, %v3027_v34  ;;  %v1138_v3 = vmul.f32 %v3475_v35, %v3030_v39  ;;  %v1139_v37 = vmul.f32 %v3475_v35, %v3039_v19  ;;  %v1140_v18 = vmul.f32 %v3475_v35, %v3042_v17 }
  0xe8   : > { %v1141_v27 = vmul.f32 %v3475_v35, %v3045_v21  ;;  %v1142_v10 = vmul.f32 %v3475_v35, %v3056_v55  ;;  %v1143_v23 = vmul.f32 %v3475_v35, %v3059_v24  ;;  %v1144_v29 = vmul.f32 %v3475_v35, %v3062_v56 }
  0xe9   : > { %v1145_v40 = vmul.f32 %v3475_v35, %v3073_v49  ;;  %v1146_v6 = vmul.f32 %v3475_v35, %v375_v31  ;;  %v1147_v4 = vmul.f32 %v3475_v35, %v376_v28  ;;  %v1148_v43 = vadd.f32 %v1132_v54, %v1111_v33  ;;  %v3476_v35 = vld [vmem:[#allocation32_spill] sm:$0xff] }
  0xea   : > { %v1149_v5 = vadd.f32 %v1133_v62, %v1112_v8  ;;  %v1150_v20 = vadd.f32 %v1134_v47, %v1113_v25  ;;  %v1151_v11 = vadd.f32 %v1135_v46, %v1114_v60  ;;  %v1152_v44 = vadd.f32 %v1136_v58, %v1115_v13  ;;  %v378_v60 = vld [vmem:[%s2272_s6 + $0x1a2] sm:$0xff] }
  0xeb   : > { %v1153_v63 = vadd.f32 %v1137_v52, %v1116_v12  ;;  %v1154_v30 = vadd.f32 %v1138_v3, %v1117_v0  ;;  %v1155_v15 = vadd.f32 %v1139_v37, %v1118_v32  ;;  %v1156_v9 = vadd.f32 %v1140_v18, %v1119_v36 }
  0xec   : > { %v1157_v45 = vadd.f32 %v1141_v27, %v1120_v16  ;;  %v1158_v50 = vadd.f32 %v1142_v10, %v1121_v59  ;;  %v1159_v57 = vadd.f32 %v1143_v23, %v1122_v14  ;;  %v1160_v53 = vadd.f32 %v1144_v29, %v1123_v7 }
  0xed   : > { %v1161_v22 = vadd.f32 %v1145_v40, %v1124_v38  ;;  %v1162_v48 = vadd.f32 %v1146_v6, %v1125_v42  ;;  %v1163_v51 = vadd.f32 %v1147_v4, %v1126_v41  ;;  %v1169_v33 = vmul.f32 %v3476_v35, %v3018_v1 }
  0xee   : > { %v1170_v8 = vmul.f32 %v3476_v35, %v3021_v2  ;;  %v1171_v25 = vmul.f32 %v3476_v35, %v3024_v26  ;;  %v1172_v13 = vmul.f32 %v3476_v35, %v3027_v34  ;;  %v1173_v12 = vmul.f32 %v3476_v35, %v3030_v39 }
  0xef   : > { %v1174_v0 = vmul.f32 %v3476_v35, %v3039_v19  ;;  %v1175_v32 = vmul.f32 %v3476_v35, %v3042_v17  ;;  %v1176_v1 = vmul.f32 %v3476_v35, %v3045_v21  ;;  %v1177_v2 = vmul.f32 %v3476_v35, %v3056_v55 }
  0xf0   : > { %v1178_v26 = vmul.f32 %v3476_v35, %v3059_v24  ;;  %v1179_v34 = vmul.f32 %v3476_v35, %v3062_v56  ;;  %v1180_v39 = vmul.f32 %v3476_v35, %v3073_v49  ;;  %v1181_v19 = vmul.f32 %v3476_v35, %v375_v31 }
  0xf1   : > { %v1182_v17 = vmul.f32 %v3476_v35, %v376_v28  ;;  %v1183_v21 = vmul.f32 %v3476_v35, %v377_v61  ;;  %v1184_v36 = vmul.f32 %v3476_v35, %v378_v60  ;;  %v1185_v55 = vadd.f32 %v1169_v33, %v1148_v43 }
  0xf2   : > { %v1186_v16 = vadd.f32 %v1170_v8, %v1149_v5  ;;  %v1187_v59 = vadd.f32 %v1171_v25, %v1150_v20  ;;  %v1188_v24 = vadd.f32 %v1172_v13, %v1151_v11  ;;  %v1189_v14 = vadd.f32 %v1173_v12, %v1152_v44 }
  0xf3   : > { %v1190_v7 = vadd.f32 %v1174_v0, %v1153_v63  ;;  %v1191_v56 = vadd.f32 %v1175_v32, %v1154_v30  ;;  %v1192_v38 = vadd.f32 %v1176_v1, %v1155_v15  ;;  %v1193_v42 = vadd.f32 %v1177_v2, %v1156_v9 }
  0xf4   : > { %v1194_v49 = vadd.f32 %v1178_v26, %v1157_v45  ;;  %v1195_v41 = vadd.f32 %v1179_v34, %v1158_v50  ;;  %v1196_v54 = vadd.f32 %v1180_v39, %v1159_v57  ;;  %v1197_v62 = vadd.f32 %v1181_v19, %v1160_v53 }
  0xf5   : > { %v1198_v47 = vadd.f32 %v1182_v17, %v1161_v22  ;;  %v1199_v46 = vadd.f32 %v1183_v21, %v1162_v48  ;;  %v1200_v58 = vadd.f32 %v1184_v36, %v1163_v51  ;;  %v1201_v52 = vpack.c.bf16 %v1186_v16, %v1185_v55 }
  0xf6   : > { %v1202_v3 = vpack.c.bf16 %v1188_v24, %v1187_v59  ;;  %v1203_v31 = vpack.c.bf16 %v1190_v7, %v1189_v14  ;;  %v3149_v37 = vpack.c.bf16 %v1192_v38, %v1191_v56  ;;  %v3151_v18 = vpack.c.bf16 %v1194_v49, %v1193_v42 }
  0xf7   : > { %v3153_v27 = vpack.c.bf16 %v1196_v54, %v1195_v41  ;;  %v3155_v10 = vpack.c.bf16 %v1198_v47, %v1197_v62  ;;  %v3164_v28 = vpack.c.bf16 %v1200_v58, %v1199_v46  ;;  %v1282_v23 = vunpack.c.l.bf16 %v1201_v52  ;;  %1780 = vst [vmem:[%s2706_s23 + $0x40] sm:$0xff] %v1201_v52  }
  0xf8   : > { %v1283_v29 = vunpack.c.h.bf16 %v1201_v52  ;;  %1781 = vst [vmem:[%s2706_s23 + $0x48] sm:$0xff] %v1202_v3   ;;  %1782 = vst [vmem:[%s2706_s23 + $0x50] sm:$0xff] %v1203_v31   ;;  %v1284_v40 = vunpack.c.l.bf16 %v1202_v3 }
  0xf9   : > { %1783 = vst [vmem:[%s2706_s23 + $0x58] sm:$0xff] %v3149_v37   ;;  %1784 = vst [vmem:[%s2706_s23 + $0x60] sm:$0xff] %v3151_v18  }
  0xfa   : > { %1785 = vst [vmem:[%s2706_s23 + $0x68] sm:$0xff] %v3153_v27   ;;  %1786 = vst [vmem:[%s2706_s23 + $0x70] sm:$0xff] %v3155_v10  }
  0xfb   : > { %1787 = vst [vmem:[%s2706_s23 + $0x78] sm:$0xff] %v3164_v28  }
  0xfc   : > { %1949 = shalt.err (!%p1946_p9)
}
  0xfd   : > { %s1950_s26 = scalar_lea.hbm %s3160_s11, 2048  ;;  %s1954_s23 = scalar_lea.hbm %s3338_s2, 4096 }
  0xfe   : > { %p1951_p1 = scmp.ne.s32.totalorder %s3160_s11, %s1950_s26  ;;  %p1955_p7 = scmp.lt.u32.totalorder %s3160_s11, %s3338_s2 }
  0xff   : > { %p1956_p11 = scmp.lt.u32.totalorder %s1954_s23, %s1950_s26  ;;  %p1958_p6 = scmp.lt.u32.totalorder %s1950_s26, %s3160_s11 }
 0x100   : > { %p1952_p2 = pnand %p1951_p1, %p2211_p10 }
 0x101   : > { %p1957_p4 = por %p1956_p11, %p1955_p7 }
 0x102   : > { %p1953_p3 = pneg %p1952_p2 }
 0x103   : > { %p1959_p8 = por %p1958_p6, %p1957_p4 }
 0x105   : > { %p1960_p12 = pnand %p1959_p8, %p1953_p3 }
 0x107   : > { %1963 = shalt.err (!%p1960_p12)
}
 0x108   : > { %s2089_s10 = smov 64   ;;  %s2090_s7 = smov 4   ;;  %v1285_v6 = vunpack.c.h.bf16 %v1202_v3  ;;  %v1298_v4 = vadd.f32 %v1283_v29, %v1282_v23  ;;  %v3477_v43 = vld [vmem:[#allocation35_spill] sm:$0xff]  ;;  %v3478_v20 = vld [vmem:[#allocation36_spill] sm:$0xff]  ;;  %v1286_v44 = vunpack.c.l.bf16 %v1203_v31  ;;  %v3479_v30 = vld [vmem:[#allocation37_spill] sm:$0xff]  ;;  %v1287_v9 = vunpack.c.h.bf16 %v1203_v31 }
 0x109   : > { %1797 = dma.vmem_to_hbm [thread:$0]  (%p2211_p10), %s3162_s12, 2048, %s3160_s11, %s1361_s30, %s2089_s10, %s2089_s10, %s2090_s7   ;;  %v830_v5 = vmul.f32 %v3477_v43, %v3477_v43  ;;  %v831_v11 = vmul.f32 %v3478_v20, %v3478_v20  ;;  %v832_v15 = vmul.f32 %v3479_v30, %v3479_v30  ;;  %v3480_v50 = vld [vmem:[#allocation38_spill] sm:$0xff]  ;;  %v1288_v22 = vunpack.c.l.bf16 %v3149_v37  ;;  %v3481_v35 = vld [vmem:[#allocation39_spill] sm:$0xff]  ;;  %v3482_v12 = vld [vmem:[#allocation40_spill] sm:$0xff] }
 0x10a   : > { %v1299_v63 = vadd.f32 %v1298_v4, %v1284_v40  ;;  %v833_v57 = vmul.f32 %v3480_v50, %v3480_v50  ;;  %v1320_v61 = vmul.f32 %v1282_v23, %v1282_v23  ;;  %v1321_v51 = vmul.f32 %v1283_v29, %v1283_v29  ;;  %v3483_v39 = vld [vmem:[#allocation41_spill] sm:$0xff]  ;;  %v3484_v59 = vld [vmem:[#allocation42_spill] sm:$0xff]  ;;  %v3485_v49 = vld [vmem:[#allocation43_spill] sm:$0xff]  ;;  %s1583_s12 = sshll.u32 %s2268_s28, 3  ;;  %s1365_s9 = sand.u32 1, %s2149_s21  }
 0x10b   : > { %v846_v53 = vadd.f32 %v831_v11, %v830_v5  ;;  %v834_v33 = vmul.f32 %v3481_v35, %v3481_v35  ;;  %v1289_v25 = vunpack.c.h.bf16 %v3149_v37  ;;  %v1322_v13 = vmul.f32 %v1284_v40, %v1284_v40  ;;  %v3486_v52 = vld [vmem:[#allocation19_spill] sm:$0xff]  ;;  %v3487_v31 = vld [vmem:[#allocation44_spill] sm:$0xff]  ;;  %v3488_v4 = vld [vmem:[#allocation45_spill] sm:$0xff]  ;;  %s263_s11 = scalar_lea.vmem [#allocation8], %s1583_s12  ;;  %s1656_s14 = sshll.u32 %s2074_s18, 7 }
 0x10c   : > { %v1300_v45 = vadd.f32 %v1299_v63, %v1285_v6  ;;  %v835_v0 = vmul.f32 %v3482_v12, %v3482_v12  ;;  %v1290_v1 = vunpack.c.l.bf16 %v3151_v18  ;;  %v1323_v26 = vmul.f32 %v1285_v6, %v1285_v6  ;;  %v3489_v30 = vld [vmem:[#allocation46_spill] sm:$0xff]  ;;  %s1403_s30 = sshll.u32 %s263_s11, 4  ;;  %s3259_s6 = scalar_lea.hbm %s3339_s3, %s1656_s14  ;;  %s3252_s30 = int_to_ptr.vmem [resolvable:$true] %s1403_s30 }
 0x10d   : > { %v847_v8 = vadd.f32 %v846_v53, %v832_v15  ;;  %v1336_v34 = vadd.f32 %v1321_v51, %v1320_v61  ;;  %v836_v19 = vmul.f32 %v3483_v39, %v3483_v39  ;;  %v1291_v21 = vunpack.c.h.bf16 %v3151_v18  ;;  %s3261_s21 = scalar_lea.sflag [#allocation9], %s1365_s9  ;;  %s1964_s22 = scalar_lea.vmem %s3252_s30, 128 }
 0x10e   : > { %v1301_v48 = vadd.f32 %v1300_v45, %v1286_v44  ;;  %v1324_v55 = vmul.f32 %v1286_v44, %v1286_v44  ;;  %v837_v24 = vmul.f32 %v3484_v59, %v3484_v59  ;;  %v1292_v7 = vunpack.c.l.bf16 %v3153_v27  ;;  %p1965_p13 = scmp.ne.s32.totalorder %s3252_s30, %s1964_s22  ;;  %s2091_s23 = smov [#allocation8]  }
 0x10f   : > { %v848_v32 = vadd.f32 %v847_v8, %v833_v57  ;;  %v1337_v16 = vadd.f32 %v1336_v34, %v1322_v13  ;;  %v1325_v38 = vmul.f32 %v1287_v9, %v1287_v9  ;;  %v838_v41 = vmul.f32 %v3485_v49, %v3485_v49  ;;  %v3491_v8 = vld [vmem:[#allocation48_spill] sm:$0xff]  ;;  %s1968_s25 = sshll.u32 %s2091_s23, 4  ;;  %s1969_s25 = int_to_ptr.vmem [resolvable:$false] %s1968_s25 }
 0x110   : > { %v1302_v60 = vadd.f32 %v1301_v48, %v1287_v9  ;;  %v1293_v62 = vunpack.c.h.bf16 %v3153_v27  ;;  %v1326_v46 = vmul.f32 %v1288_v22, %v1288_v22  ;;  %v823_v3 = vrot.slane %v3486_v52, 4  ;;  %p1966_p0 = pnand %p1965_p13, %p2211_p10  ;;  %s1970_s13 = scalar_lea.vmem %s1969_s25, 256 }
 0x111   : > { %v849_v17 = vadd.f32 %v848_v32, %v834_v33  ;;  %v1338_v42 = vadd.f32 %v1337_v16, %v1323_v26  ;;  %v839_v37 = vmul.f32 %v3487_v31, %v3487_v31  ;;  %v1294_v23 = vunpack.c.l.bf16 %v3155_v10  ;;  %p1971_p9 = scmp.lt.s32.totalorder %s3252_s30, %s1969_s25  ;;  %p1972_p1 = scmp.lt.s32.totalorder %s1970_s13, %s1964_s22 }
 0x112   : > { %v1303_v2 = vadd.f32 %v1302_v60, %v1288_v22  ;;  %v1327_v40 = vmul.f32 %v1289_v25, %v1289_v25  ;;  %v840_v43 = vmul.f32 %v3488_v4, %v3488_v4  ;;  %v1295_v27 = vunpack.c.h.bf16 %v3155_v10  ;;  %v3490_v22 = vld [vmem:[#allocation47_spill] sm:$0xff]  ;;  %p1967_p5 = pneg %p1966_p0 }
 0x113   : > { %v850_v14 = vadd.f32 %v849_v17, %v835_v0  ;;  %v1339_v58 = vadd.f32 %v1338_v42, %v1324_v55  ;;  %v1328_v11 = vmul.f32 %v1290_v1, %v1290_v1  ;;  %v824_v63 = vadd.f32 %v823_v3, %v3486_v52  ;;  %p1973_p2 = por %p1972_p1, %p1971_p9 }
 0x114   : > { %v1304_v36 = vadd.f32 %v1303_v2, %v1289_v25  ;;  %v841_v15 = vmul.f32 %v3489_v30, %v3489_v30  ;;  %v1296_v45 = vunpack.c.l.bf16 %v3164_v28  ;;  %v1329_v57 = vmul.f32 %v1291_v21, %v1291_v21 }
 0x115   : > { %v851_v54 = vadd.f32 %v850_v14, %v836_v19  ;;  %v1340_v6 = vadd.f32 %v1339_v58, %v1325_v38  ;;  %v842_v48 = vmul.f32 %v3490_v22, %v3490_v22  ;;  %v1297_v10 = vunpack.c.h.bf16 %v3164_v28  ;;  %v3493_v28 = vld [vmem:[#allocation50_spill] sm:$0xff]  ;;  %p1974_p3 = pnand %p1973_p2, %p1967_p5 }
 0x116   : > { %v1305_v56 = vadd.f32 %v1304_v36, %v1290_v1  ;;  %v1330_v35 = vmul.f32 %v1292_v7, %v1292_v7  ;;  %v843_v25 = vmul.f32 %v3491_v8, %v3491_v8  ;;  %v825_v13 = vrot.slane %v824_v63, 2  ;;  %v3492_v1 = vld [vmem:[#allocation49_spill] sm:$0xff] }
 0x117   : > { %v852_v18 = vadd.f32 %v851_v54, %v837_v24  ;;  %v1341_v44 = vadd.f32 %v1340_v6, %v1326_v46  ;;  %v1331_v0 = vmul.f32 %v1293_v62, %v1293_v62  ;;  %v844_v2 = vmul.f32 %v3492_v1, %v3492_v1 }
 0x118   : > { %v1306_v47 = vadd.f32 %v1305_v56, %v1291_v21  ;;  %v1332_v39 = vmul.f32 %v1294_v23, %v1294_v23  ;;  %v845_v17 = vmul.f32 %v3493_v28, %v3493_v28  ;;  %v826_v36 = vadd.f32 %v825_v13, %v824_v63 }
 0x119   : > { %v853_v5 = vadd.f32 %v852_v18, %v838_v41  ;;  %v1342_v53 = vadd.f32 %v1341_v44, %v1327_v40  ;;  %v1333_v16 = vmul.f32 %v1295_v27, %v1295_v27  ;;  %v1335_v41 = vmul.f32 %v1297_v10, %v1297_v10 }
 0x11a   : > { %v1307_v29 = vadd.f32 %v1306_v47, %v1292_v7  ;;  %v1334_v7 = vmul.f32 %v1296_v45, %v1296_v45  ;;  %v827_v42 = vrot.slane %v826_v36, 1 }
 0x11b   : > { %v854_v9 = vadd.f32 %v853_v5, %v839_v37  ;;  %v1343_v33 = vadd.f32 %v1342_v53, %v1328_v11 }
 0x11c   : > { %v1308_v20 = vadd.f32 %v1307_v29, %v1293_v62  ;;  %v828_v52 = vadd.f32 %v827_v42, %v826_v36 }
 0x11d   : > { %v855_v61 = vadd.f32 %v854_v9, %v840_v43  ;;  %v1344_v32 = vadd.f32 %v1343_v33, %v1329_v57 }
 0x11e   : > { %v1309_v50 = vadd.f32 %v1308_v20, %v1294_v23 }
 0x11f   : > { %v856_v60 = vadd.f32 %v855_v61, %v841_v15  ;;  %v1345_v19 = vadd.f32 %v1344_v32, %v1330_v35 }
 0x120   : > { %v1310_v51 = vadd.f32 %v1309_v50, %v1295_v27 }
 0x121   : > { %v857_v26 = vadd.f32 %v856_v60, %v842_v48  ;;  %v1346_v59 = vadd.f32 %v1345_v19, %v1331_v0 }
 0x122   : > { %v1311_v12 = vadd.f32 %v1310_v51, %v1296_v45 }
 0x123   : > { %v858_v21 = vadd.f32 %v857_v26, %v843_v25  ;;  %v1347_v56 = vadd.f32 %v1346_v59, %v1332_v39 }
 0x124   : > { %v1312_v34 = vadd.f32 %v1311_v12, %v1297_v10 }
 0x125   : > { %v859_v24 = vadd.f32 %v858_v21, %v844_v2  ;;  %v1348_v54 = vadd.f32 %v1347_v56, %v1333_v16 }
 0x126   : > { %v1313_v55 = vrot.slane %v1312_v34, 4 }
 0x127   : > { %v860_v38 = vadd.f32 %v859_v24, %v845_v17  ;;  %v1349_v46 = vadd.f32 %v1348_v54, %v1334_v7 }
 0x128   : > { %v1314_v14 = vadd.f32 %v1313_v55, %v1312_v34 }
 0x129   : > { %v861_v62 = vrot.slane %v860_v38, 4  ;;  %v1350_v31 = vadd.f32 %v1349_v46, %v1335_v41 }
 0x12a   : > { %v1315_v49 = vrot.slane %v1314_v14, 2 }
 0x12b   : > { %v862_v58 = vadd.f32 %v861_v62, %v860_v38  ;;  %v1351_v23 = vrot.slane %v1350_v31, 4 }
 0x12c   : > { %v1316_v47 = vadd.f32 %v1315_v49, %v1314_v14 }
 0x12d   : > { %v863_v37 = vrot.slane %v862_v58, 2  ;;  %v1352_v6 = vadd.f32 %v1351_v23, %v1350_v31 }
 0x12e   : > { %v1317_v3 = vrot.slane %v1316_v47, 1 }
 0x12f   : > { %v864_v29 = vadd.f32 %v863_v37, %v862_v58  ;;  %v1353_v43 = vrot.slane %v1352_v6, 2 }
 0x130   : > { %v1318_v18 = vadd.f32 %v1317_v3, %v1316_v47 }
 0x131   : > { %v865_v4 = vrot.slane %v864_v29, 1 }
 0x132   : > { %v1319_v40 = vadd.f32 %v1318_v18, %v828_v52 }
 0x134   : > { %1358 = vst [vmem:[%s263_s11] sm:$0xff] %v1319_v40 }
 0x135   : > { %1977 = shalt.err (!%p1974_p3)
}
 0x136   : > { %s1978_s10 = scalar_lea.hbm %s3259_s6, 128  ;;  %s1982_s9 = scalar_lea.hbm %s3339_s3, 256 }
 0x137   : > { %p1979_p7 = scmp.ne.s32.totalorder %s3259_s6, %s1978_s10  ;;  %p1983_p6 = scmp.lt.u32.totalorder %s3259_s6, %s3339_s3 }
 0x138   : > { %p1984_p8 = scmp.lt.u32.totalorder %s1982_s9, %s1978_s10  ;;  %p1986_p13 = scmp.lt.u32.totalorder %s1978_s10, %s3259_s6 }
 0x139   : > { %p1980_p11 = pnand %p1979_p7, %p2211_p10 }
 0x13a   : > { %p1985_p12 = por %p1984_p8, %p1983_p6 }
 0x13b   : > { %p1981_p4 = pneg %p1980_p11 }
 0x13c   : > { %p1987_p0 = por %p1986_p13, %p1985_p12 }
 0x13e   : > { %p1988_p5 = pnand %p1987_p0, %p1981_p4 }
 0x140   : > { %1991 = shalt.err (!%p1988_p5)
}
 0x141   : > { %1798 = dma.vmem_to_hbm [thread:$0]  (%p2211_p10), %s3252_s30, 128, %s3259_s6, %s3261_s21   ;;  %v1354_v5 = vadd.f32 %v1353_v43, %v1352_v6  ;;  %v866_v27 = vadd.f32 %v865_v4, %v864_v29 }
 0x142   : > { %s270_s22 = scalar_lea.vmem [#allocation10], %s1583_s12  ;;  %s1415_s10 = scalar_lea.hbm %s3340_s4, %s1656_s14 }
 0x143   : > { %v1355_v20 = vrot.slane %v1354_v5, 1  ;;  %s1417_s23 = sshll.u32 %s270_s22, 4  ;;  %s2092_s28 = smov [#allocation10]   ;;  %s3287_s23 = int_to_ptr.vmem [resolvable:$true] %s1417_s23 }
 0x144   : > { %s1992_s30 = scalar_lea.vmem %s3287_s23, 128  ;;  %s1996_s12 = sshll.u32 %s2092_s28, 4  ;;  %s1997_s12 = int_to_ptr.vmem [resolvable:$false] %s1996_s12 }
 0x145   : > { %v1356_v11 = vadd.f32 %v1355_v20, %v1354_v5  ;;  %p1993_p9 = scmp.ne.s32.totalorder %s3287_s23, %s1992_s30  ;;  %s1998_s6 = scalar_lea.vmem %s1997_s12, 256 }
 0x146   : > { %p1999_p3 = scmp.lt.s32.totalorder %s3287_s23, %s1997_s12  ;;  %p2000_p7 = scmp.lt.s32.totalorder %s1998_s6, %s1992_s30 }
 0x147   : > { %v1357_v44 = vadd.f32 %v1356_v11, %v866_v27  ;;  %p1994_p1 = pnand %p1993_p9, %p2211_p10 }
 0x148   : > { %p2001_p11 = por %p2000_p7, %p1999_p3 }
 0x149   : > { %1359 = vst [vmem:[%s270_s22] sm:$0xff] %v1357_v44  ;;  %p1995_p2 = pneg %p1994_p1 }
 0x14b   : > { %p2002_p4 = pnand %p2001_p11, %p1995_p2 }
 0x14d   : > { %2005 = shalt.err (!%p2002_p4)
}
 0x14e   : > { %s2006_s18 = scalar_lea.hbm %s1415_s10, 128  ;;  %s2010_s11 = scalar_lea.hbm %s3340_s4, 256 }
 0x14f   : > { %p2007_p6 = scmp.ne.s32.totalorder %s1415_s10, %s2006_s18  ;;  %p2011_p13 = scmp.lt.u32.totalorder %s1415_s10, %s3340_s4 }
 0x150   : > { %p2012_p0 = scmp.lt.u32.totalorder %s2010_s11, %s2006_s18  ;;  %p2014_p9 = scmp.lt.u32.totalorder %s2006_s18, %s1415_s10 }
 0x151   : > { %p2008_p8 = pnand %p2007_p6, %p2211_p10 }
 0x152   : > { %p2013_p5 = por %p2012_p0, %p2011_p13 }
 0x153   : > { %p2009_p12 = pneg %p2008_p8 }
 0x154   : > { %p2015_p1 = por %p2014_p9, %p2013_p5 }
 0x156   : > { %p2016_p2 = pnand %p2015_p1, %p2009_p12 }
 0x158   : > { %2019 = shalt.err (!%p2016_p2)
}
 0x159   : > { %1799 = dma.vmem_to_hbm [thread:$0]  (%p2211_p10), %s3287_s23, 128, %s1415_s10, %s3261_s21  }
 0x15a PF: > { %s1429_s26 = sand.u32 1, %s2062_s15   ;;  %p3494_p3 = scmp.ne.s32.totalorder %s3400_s24, 0 }
 0x15b   : > { %p3495_p7 = scmp.ge.s32.totalorder %s2082_s20, 2  ;;  %s1430_s22 = scalar_lea.sflag [#allocation4], %s1429_s26 }
 0x15d   : > { %p1812_p11 = pnand %p3495_p7, %p3494_p3 }
 0x15f   : > { %2053 = dma.done.wait (!%p1812_p11), %s1430_s22, 2048  }
 0x160   : > { %2055 = vsyncadd (!%p1812_p11), %s1430_s22, 4294965248  ;;  %s3496_s25 = sadd.s32 4294967294, %s2082_s20  }
 0x161   : > { %s1438_s13 = sand.u32 1, %s3496_s25  }
 0x162   : > { %s1439_s30 = scalar_lea.sflag [#allocation9], %s1438_s13 }
 0x163   : > { %2057 = dma.done.wait (!%p1812_p11), %s1439_s30, 256  }
 0x164   : > { %2059 = vsyncadd (!%p1812_p11), %s1439_s30, 4294967040  ;;  %s25_s20 = sadd.s32 1, %s2082_s20   ;;  %s3497_s15 = smov %s2066_s16 }
 0x165   : > { %p22_p10 = scmp.ge.s32.totalorder %s25_s20, 4   ;;  %s3498_s16 = smov %s2070_s17 }
 0x166   : > { %s3499_s17 = smov %s2220_s8  ;;  %s3500_s18 = smov %s2078_s19 }
 0x167   : > { %s3501_s19 = smov %s3503_s29  ;;  %24 = sbr.rel (!%p22_p10) target bundleno = 9 (0x9), region = 110 }
 0x16e   :  { %1453 = vsyncpa [#allocation3], 1 }
 0x16f   :  { %1455 = vsyncpa [#allocation3 + $0x1], 1 }
 0x170   :  { %1456 = vsyncpa [#allocation6], 1 }
 0x171   :  { %1457 = vsyncpa [#allocation4], 1 }
 0x172   :  { %1459 = vsyncpa [#allocation4 + $0x1], 1 }
 0x173   :  { %1460 = vsyncpa [#allocation9], 1 }
 0x174   :  { %1462 = vsyncpa [#allocation9 + $0x1], 1 }

</bundles_post_ra>
